<compile_context>
chip_gen: v6e
topology: v6e:2x2x1
jax: 0.10.0
libtpu: 0.0.40
codegen_flags: <defaults>
</compile_context>

<pallas_src>
import numpy as np

import jax
import jax.numpy as jnp
from jax import lax
from jax.experimental import pallas as pl
from jax.experimental.pallas import tpu as pltpu

# ----------------------------- configuration ------------------------------
H = 2            # heads
DK = 16          # dim per head
D = H * DK       # model dim (= h * d_k) = 32
FF = 4 * D       # feed-forward hidden = 128
VOCAB = 16
S_ENC = 8        # number of encoder nodes
S_DEC = 8        # number of decoder nodes
POS_MAX = 64     # positional table length
MAX_DEPTH = 8
THRES = 0.99
ACT_LOSS_WEIGHT = 0.01
LN_EPS = 1e-5
NEG_INF = -1e9
SQRT_D = float(np.sqrt(D))
SCALE = 1.0 / float(np.sqrt(DK))

# --------------------- packed-parameter layouts (host + kernel) ---------------------
VPAD = 128   # every 1-D param gets one 128-lane row
VROWS = [
    ("enc_ln1_g", D), ("enc_ln1_b", D), ("enc_bqkv", 3 * D), ("enc_bo", D),
    ("enc_lnf_g", D), ("enc_lnf_b", D), ("enc_b1", FF), ("enc_b2", D),
    ("enc_norm_g", D), ("enc_norm_b", D),
    ("he_ln_g", D), ("he_ln_b", D), ("he_w", D), ("he_b", 1),
    ("dec_ln1_g", D), ("dec_ln1_b", D), ("dec_bqkv0", 3 * D), ("dec_bo0", D),
    ("dec_ln2_g", D), ("dec_ln2_b", D), ("dec_bq1", D), ("dec_bkv1", 2 * D), ("dec_bo1", D),
    ("dec_lnf_g", D), ("dec_lnf_b", D), ("dec_b1", FF), ("dec_b2", D),
    ("dec_norm_g", D), ("dec_norm_b", D),
    ("hd_ln_g", D), ("hd_ln_b", D), ("hd_w", D), ("hd_b", 1),
    ("gen_b", VOCAB),
]
VIDX = {name: i for i, (name, _) in enumerate(VROWS)}
VLEN = dict(VROWS)
NV = len(VROWS)

WPAD = 128   # every (D, *) weight matrix gets one 128-lane block (aligned slices)
WBLOCKS = [
    ("enc_Wqkv", 3 * D), ("enc_Wo", D), ("enc_W1", FF),
    ("dec_Wqkv0", 3 * D), ("dec_Wo0", D), ("dec_Wq1", D),
    ("dec_Wkv1", 2 * D), ("dec_Wo1", D), ("dec_W1", FF),
    ("gen_W", VOCAB),
]
WIDX = {name: i for i, (name, _) in enumerate(WBLOCKS)}
WWIDTH = dict(WBLOCKS)
NW = len(WBLOCKS)

# packed-table row offsets (src_emb | tgt_emb | pos_tab | time_tab)
ROW_SRC = 0
ROW_TGT = VOCAB
ROW_POS = 2 * VOCAB
ROW_TIME = 2 * VOCAB + POS_MAX
TAB_ROWS = ROW_TIME + MAX_DEPTH


def _vmem():
    return pl.BlockSpec(memory_space=pltpu.MemorySpace.VMEM)


# ----------------------------- the single fused kernel ------------------------------
def _utransformer_kernel(src_ids_ref, src_pos_ref, tgt_ids_ref, tgt_pos_ref,
                         tabs_ref, wpack_ref, w2_ref, vpack_ref,
                         logp_ref, loss_ref):
    f32 = jnp.float32

    # --- point-of-use parameter readers (VMEM reloads are ~free; keeps vregs short-lived)
    def vp(name):
        i = VIDX[name]
        return vpack_ref[i:i + 1, 0:VLEN[name]]

    def wblk(name):
        b = WIDX[name]
        return wpack_ref[:, b * WPAD:b * WPAD + WWIDTH[name]]

    def ln(x, g, b):
        mu = jnp.mean(x, axis=-1, keepdims=True)
        var = jnp.mean((x - mu) ** 2, axis=-1, keepdims=True)
        return (x - mu) * lax.rsqrt(var + LN_EPS) * g + b

    def mha_proj(q, k, v, bias, wo, bo):
        """Multi-head exp-score attention fused with the output projection.
        Per-head context goes through its own row-block of Wo and is summed, so no
        lane-concatenate of head outputs is needed."""
        out = None
        for h in range(H):
            sl = slice(h * DK, (h + 1) * DK)
            qh, kh, vh = q[:, sl], k[:, sl], v[:, sl]
            sc = lax.dot_general(qh, kh, (((1,), (1,)), ((), ())),
                                 preferred_element_type=f32) * SCALE
            if bias is not None:
                sc = sc + bias                               # mask out non-edges
            sc = sc - jnp.max(sc, axis=-1, keepdims=True)    # stable exp (wv/z unchanged)
            p = jnp.exp(sc)                                  # scaled_exp('score')
            z = jnp.sum(p, axis=-1, keepdims=True)           # sum(score)
            wv = jnp.dot(p, vh, preferred_element_type=f32)  # sum(v*score)
            ctx = wv * pl.reciprocal(z, approx=True)         # wv / z (EUP slot)
            part = jnp.dot(ctx, wo[sl, :], preferred_element_type=f32)
            out = part if out is None else out + part
        return out + bo

    def halt(x, sum_p, r, s, act, g, b, w, hb, step):
        """HaltingUnit.forward + halt_and_accum, masked by previously-active nodes."""
        xn = ln(x, g, b)
        p = jax.nn.sigmoid(jnp.sum(xn * w, axis=-1, keepdims=True) + hb)
        sum_p_new = sum_p + p
        cont = (sum_p_new < THRES).astype(f32)               # active = (sum_p<thres) & !end
        cont = jnp.where(step == MAX_DEPTH - 1, 0.0, cont)
        r_new = r + cont * ((1.0 - sum_p_new) - r)
        s_new = s + ((1.0 - cont) * r_new + cont * p) * x
        # node filtering: only previously-active nodes take the new values
        sum_p = sum_p + act * (sum_p_new - sum_p)
        r = r + act * (r_new - r)
        s = s + act * (s_new - s)
        act = act * cont
        return sum_p, r, s, act

    # --- embedding / positional lookups as exact one-hot matmuls (tables live in VMEM)
    def embed(ids_ref, row0, rows, n):
        oh = (ids_ref[...] ==
              lax.broadcasted_iota(jnp.int32, (n, rows), 1)).astype(f32)
        return jnp.dot(oh, tabs_ref[row0:row0 + rows, :], preferred_element_type=f32)

    x0_e = embed(src_ids_ref, ROW_SRC, VOCAB, S_ENC) * SQRT_D
    pos_e = embed(src_pos_ref, ROW_POS, POS_MAX, S_ENC)
    x0_d = embed(tgt_ids_ref, ROW_TGT, VOCAB, S_DEC) * SQRT_D
    pos_d = embed(tgt_pos_ref, ROW_POS, POS_MAX, S_DEC)

    # ------------------------------ encoder ACT loop ------------------------------
    def enc_body(step, carry):
        x, s, sum_p, r, act, q_st, k_st, v_st = carry
        # step_forward: x + pos_enc(pos) + time_enc(step)    (dropout == identity)
        t = tabs_ref[pl.ds(ROW_TIME + step, 1), :]
        x = x + act * ((x + pos_e + t) - x)
        # pre_func('qkv'): layernorm + fused QKV projection
        xn = ln(x, vp("enc_ln1_g"), vp("enc_ln1_b"))
        qkv = jnp.dot(xn, wblk("enc_Wqkv"), preferred_element_type=f32) + vp("enc_bqkv")
        q_st = q_st + act * (qkv[:, 0:D] - q_st)
        k_st = k_st + act * (qkv[:, D:2 * D] - k_st)
        v_st = v_st + act * (qkv[:, 2 * D:3 * D] - v_st)
        # propagate_attention over the fully-connected ee edges + output projection
        o = mha_proj(q_st, k_st, v_st, None, wblk("enc_Wo"), vp("enc_bo"))
        x1 = x + o
        # FFN sublayer
        xf = ln(x1, vp("enc_lnf_g"), vp("enc_lnf_b"))
        hid = jnp.maximum(
            jnp.dot(xf, wblk("enc_W1"), preferred_element_type=f32) + vp("enc_b1"), 0.0)
        ff = jnp.dot(hid, w2_ref[0:FF, :], preferred_element_type=f32) + vp("enc_b2")
        x = x + act * ((x1 + ff) - x)
        # halt_and_accum('enc', end)
        sum_p, r, s, act = halt(x, sum_p, r, s, act,
                                vp("he_ln_g"), vp("he_ln_b"), vp("he_w"), vp("he_b"), step)
        return x, s, sum_p, r, act, q_st, k_st, v_st

    zD_e = jnp.zeros((S_ENC, D), f32)
    z1_e = jnp.zeros((S_ENC, 1), f32)
    o1_e = jnp.ones((S_ENC, 1), f32)
    _, s_e, _, r_e, _, _, _, _ = lax.fori_loop(
        0, MAX_DEPTH, enc_body, (x0_e, zD_e, z1_e, o1_e, o1_e, zD_e, zD_e, zD_e))
    x_enc = ln(s_e, vp("enc_norm_g"), vp("enc_norm_b"))

    # pre_func('kv', 1) on encoder nodes: constant across decoder steps -> compute once
    kv_ed = jnp.dot(x_enc, wblk("dec_Wkv1"), preferred_element_type=f32) + vp("dec_bkv1")
    k_ed = kv_ed[:, 0:D]
    v_ed = kv_ed[:, D:2 * D]

    # causal (dd-edge) additive mask, built in-kernel
    row = lax.broadcasted_iota(jnp.int32, (S_DEC, S_DEC), 0)
    col = lax.broadcasted_iota(jnp.int32, (S_DEC, S_DEC), 1)
    cmask = jnp.where(col <= row, 0.0, NEG_INF).astype(f32)

    # ------------------------------ decoder ACT loop ------------------------------
    def dec_body(step, carry):
        x, s, sum_p, r, act, q_st, k_st, v_st = carry
        # step_forward
        t = tabs_ref[pl.ds(ROW_TIME + step, 1), :]
        x = x + act * ((x + pos_d + t) - x)
        # sublayer 0: masked self-attention (causal dd edges via additive bias)
        xn = ln(x, vp("dec_ln1_g"), vp("dec_ln1_b"))
        qkv = jnp.dot(xn, wblk("dec_Wqkv0"), preferred_element_type=f32) + vp("dec_bqkv0")
        q_st = q_st + act * (qkv[:, 0:D] - q_st)
        k_st = k_st + act * (qkv[:, D:2 * D] - k_st)
        v_st = v_st + act * (qkv[:, 2 * D:3 * D] - v_st)
        o = mha_proj(q_st, k_st, v_st, cmask, wblk("dec_Wo0"), vp("dec_bo0"))
        x = x + act * ((x + o) - x)
        # sublayer 1: enc-dec attention + FFN
        xn2 = ln(x, vp("dec_ln2_g"), vp("dec_ln2_b"))
        q1 = jnp.dot(xn2, wblk("dec_Wq1"), preferred_element_type=f32) + vp("dec_bq1")
        o2 = mha_proj(q1, k_ed, v_ed, None, wblk("dec_Wo1"), vp("dec_bo1"))
        x1 = x + o2
        xf = ln(x1, vp("dec_lnf_g"), vp("dec_lnf_b"))
        hid = jnp.maximum(
            jnp.dot(xf, wblk("dec_W1"), preferred_element_type=f32) + vp("dec_b1"), 0.0)
        ff = jnp.dot(hid, w2_ref[FF:2 * FF, :], preferred_element_type=f32) + vp("dec_b2")
        x = x + act * ((x1 + ff) - x)
        # halt_and_accum('dec', end)
        sum_p, r, s, act = halt(x, sum_p, r, s, act,
                                vp("hd_ln_g"), vp("hd_ln_b"), vp("hd_w"), vp("hd_b"), step)
        return x, s, sum_p, r, act, q_st, k_st, v_st

    zD_d = jnp.zeros((S_DEC, D), f32)
    z1_d = jnp.zeros((S_DEC, 1), f32)
    o1_d = jnp.ones((S_DEC, 1), f32)
    _, s_d, _, r_d, _, _, _, _ = lax.fori_loop(
        0, MAX_DEPTH, dec_body, (x0_d, zD_d, z1_d, o1_d, o1_d, zD_d, zD_d, zD_d))
    x_dec = ln(s_d, vp("dec_norm_g"), vp("dec_norm_b"))

    # generator: Linear + log_softmax
    logits = jnp.dot(x_dec, wblk("gen_W"), preferred_element_type=f32) + vp("gen_b")
    m = jnp.max(logits, axis=-1, keepdims=True)
    sh = logits - m
    logp_ref[...] = sh - jnp.log(jnp.sum(jnp.exp(sh), axis=-1, keepdims=True))

    # ACT ponder loss over all (enc + dec) nodes
    loss = (jnp.sum(r_e, keepdims=True) + jnp.sum(r_d, keepdims=True)) / float(S_ENC + S_DEC)
    loss_ref[...] = loss * ACT_LOSS_WEIGHT


# ----------------------------- host-side wrapper ------------------------------
def utransformer_forward(packed, src_ids, src_pos, tgt_ids, tgt_pos):
    """src/tgt ids and positions are (S, 1) int32 arrays; packed is pack_params(...)."""
    logp, loss = pl.pallas_call(
        _utransformer_kernel,
        out_shape=(jax.ShapeDtypeStruct((S_DEC, VOCAB), jnp.float32),   # log-probs
                   jax.ShapeDtypeStruct((1, 1), jnp.float32)),          # weighted act loss
        in_specs=[_vmem()] * 8,
        out_specs=(_vmem(), _vmem()),
    )(src_ids, src_pos, tgt_ids, tgt_pos,
      packed["tabs"], packed["wpack"], packed["w2pack"], packed["vpack"])
    return logp, loss[0, 0]


# ----------------------------- parameters ------------------------------
def sinusoid_table(length, dim):
    pos = np.arange(length)[:, None].astype(np.float64)
    i = np.arange(dim)[None, :].astype(np.float64)
    angle = pos / np.power(10000.0, (2.0 * (i // 2)) / dim)
    tab = np.zeros((length, dim))
    tab[:, 0::2] = np.sin(angle[:, 0::2])
    tab[:, 1::2] = np.cos(angle[:, 1::2])
    return jnp.asarray(tab, jnp.float32)


def init_params(key):
    keys = iter(jax.random.split(key, 64))

    def dense(din, dout):
        return (jax.random.normal(next(keys), (din, dout), jnp.float32) * 0.02,
                jnp.zeros((dout,), jnp.float32))

    def ln_p():
        return jnp.ones((D,), jnp.float32), jnp.zeros((D,), jnp.float32)

    def halting_unit():
        w = jax.random.normal(next(keys), (D,), jnp.float32) * 0.02
        b = jnp.ones((1,), jnp.float32)            # halting_bias_init = 1.0
        g, bb = ln_p()
        return {"ln_g": g, "ln_b": bb, "w": w, "b": b}

    def qkv_fused():
        wq, bq = dense(D, D)
        wk, bk = dense(D, D)
        wv, bv = dense(D, D)
        return (jnp.concatenate([wq, wk, wv], axis=1),
                jnp.concatenate([bq, bk, bv], axis=0))

    enc = {}
    enc["Wqkv"], enc["bqkv"] = qkv_fused()
    enc["Wo"], enc["bo"] = dense(D, D)
    enc["ln1_g"], enc["ln1_b"] = ln_p()
    enc["lnf_g"], enc["lnf_b"] = ln_p()
    enc["W1"], enc["b1"] = dense(D, FF)
    enc["W2"], enc["b2"] = dense(FF, D)
    enc["norm_g"], enc["norm_b"] = ln_p()

    dec = {}
    dec["Wqkv0"], dec["bqkv0"] = qkv_fused()
    dec["Wo0"], dec["bo0"] = dense(D, D)
    dec["Wq1"], dec["bq1"] = dense(D, D)
    wk1, bk1 = dense(D, D)
    wv1, bv1 = dense(D, D)
    dec["Wkv1"] = jnp.concatenate([wk1, wv1], axis=1)
    dec["bkv1"] = jnp.concatenate([bk1, bv1], axis=0)
    dec["Wo1"], dec["bo1"] = dense(D, D)
    dec["ln1_g"], dec["ln1_b"] = ln_p()
    dec["ln2_g"], dec["ln2_b"] = ln_p()
    dec["lnf_g"], dec["lnf_b"] = ln_p()
    dec["W1"], dec["b1"] = dense(D, FF)
    dec["W2"], dec["b2"] = dense(FF, D)
    dec["norm_g"], dec["norm_b"] = ln_p()

    params = {
        "src_emb": jax.random.normal(next(keys), (VOCAB, D), jnp.float32) * 0.02,
        "tgt_emb": jax.random.normal(next(keys), (VOCAB, D), jnp.float32) * 0.02,
        "enc": enc,
        "dec": dec,
        "halt_enc": halting_unit(),
        "halt_dec": halting_unit(),
        "gen_W": jax.random.normal(next(keys), (D, VOCAB), jnp.float32) * 0.02,
        "gen_b": jnp.zeros((VOCAB,), jnp.float32),
        "pos_tab": sinusoid_table(POS_MAX, D),
        "time_tab": sinusoid_table(MAX_DEPTH + 1, D),
    }
    return params


def pack_params(params):
    """Pack all parameters into 4 dense arrays (done once, outside the jitted forward)."""
    enc, dec = params["enc"], params["dec"]
    he, hd = params["halt_enc"], params["halt_dec"]

    vec = {
        "enc_ln1_g": enc["ln1_g"], "enc_ln1_b": enc["ln1_b"],
        "enc_bqkv": enc["bqkv"], "enc_bo": enc["bo"],
        "enc_lnf_g": enc["lnf_g"], "enc_lnf_b": enc["lnf_b"],
        "enc_b1": enc["b1"], "enc_b2": enc["b2"],
        "enc_norm_g": enc["norm_g"], "enc_norm_b": enc["norm_b"],
        "he_ln_g": he["ln_g"], "he_ln_b": he["ln_b"], "he_w": he["w"], "he_b": he["b"],
        "dec_ln1_g": dec["ln1_g"], "dec_ln1_b": dec["ln1_b"],
        "dec_bqkv0": dec["bqkv0"], "dec_bo0": dec["bo0"],
        "dec_ln2_g": dec["ln2_g"], "dec_ln2_b": dec["ln2_b"],
        "dec_bq1": dec["bq1"], "dec_bkv1": dec["bkv1"], "dec_bo1": dec["bo1"],
        "dec_lnf_g": dec["lnf_g"], "dec_lnf_b": dec["lnf_b"],
        "dec_b1": dec["b1"], "dec_b2": dec["b2"],
        "dec_norm_g": dec["norm_g"], "dec_norm_b": dec["norm_b"],
        "hd_ln_g": hd["ln_g"], "hd_ln_b": hd["ln_b"], "hd_w": hd["w"], "hd_b": hd["b"],
        "gen_b": params["gen_b"],
    }
    rows = []
    for name, length in VROWS:
        a = jnp.asarray(vec[name], jnp.float32).reshape(-1)
        rows.append(jnp.pad(a, (0, VPAD - length)))
    vpack = jnp.stack(rows, axis=0)                                   # (NV, 128)

    mats = {
        "enc_Wqkv": enc["Wqkv"], "enc_Wo": enc["Wo"], "enc_W1": enc["W1"],
        "dec_Wqkv0": dec["Wqkv0"], "dec_Wo0": dec["Wo0"], "dec_Wq1": dec["Wq1"],
        "dec_Wkv1": dec["Wkv1"], "dec_Wo1": dec["Wo1"], "dec_W1": dec["W1"],
        "gen_W": params["gen_W"],
    }
    blocks = []
    for name, width in WBLOCKS:
        w = jnp.asarray(mats[name], jnp.float32)
        blocks.append(jnp.pad(w, ((0, 0), (0, WPAD - width))))
    wpack = jnp.concatenate(blocks, axis=1)                           # (D, NW*128)

    w2pack = jnp.concatenate([enc["W2"], dec["W2"]], axis=0)          # (2*FF, D)

    tabs = jnp.concatenate([params["src_emb"], params["tgt_emb"],
                            params["pos_tab"],
                            params["time_tab"][:MAX_DEPTH]], axis=0)  # (TAB_ROWS, D)
    return {"vpack": vpack, "wpack": wpack, "w2pack": w2pack, "tabs": tabs}


# ----------------------------- main ------------------------------
if __name__ == "__main__":
    key = jax.random.PRNGKey(0)
    k_par, k_src, k_tgt = jax.random.split(key, 3)
    params = init_params(k_par)
    packed = pack_params(params)

    src_ids = jax.random.randint(k_src, (S_ENC,), 0, VOCAB).reshape(S_ENC, 1).astype(jnp.int32)
    tgt_ids = jax.random.randint(k_tgt, (S_DEC,), 0, VOCAB).reshape(S_DEC, 1).astype(jnp.int32)
    src_pos = jnp.arange(S_ENC, dtype=jnp.int32).reshape(S_ENC, 1)
    tgt_pos = jnp.arange(S_DEC, dtype=jnp.int32).reshape(S_DEC, 1)

    fwd = jax.jit(utransformer_forward)
    logp, act_loss = fwd(packed, src_ids, src_pos, tgt_ids, tgt_pos)
    jax.block_until_ready((logp, act_loss))

    assert logp.shape == (S_DEC, VOCAB)
    assert bool(jnp.isfinite(logp).all()) and bool(jnp.isfinite(act_loss))
    print("KERNEL_OK")
</pallas_src>

<mosaic_0001>
module attributes {stable_mosaic.version = 11 : i64} {
  func.func @_utransformer_kernel(%arg0: memref<8x1xi32, #tpu.memory_space<vmem>>, %arg1: memref<8x1xi32, #tpu.memory_space<vmem>>, %arg2: memref<8x1xi32, #tpu.memory_space<vmem>>, %arg3: memref<8x1xi32, #tpu.memory_space<vmem>>, %arg4: memref<104x32xf32, #tpu.memory_space<vmem>>, %arg5: memref<32x1280xf32, #tpu.memory_space<vmem>>, %arg6: memref<256x32xf32, #tpu.memory_space<vmem>>, %arg7: memref<34x128xf32, #tpu.memory_space<vmem>>, %arg8: memref<8x16xf32, #tpu.memory_space<vmem>>, %arg9: memref<1x1xf32, #tpu.memory_space<vmem>>) attributes {dimension_semantics = [], scalar_prefetch = 0 : i64, scratch_operands = 0 : i64, tpu.core_type = #tpu.core_type<tc>} {
    %c0 = arith.constant 0 : index
    %c0_0 = arith.constant 0 : index
    %0 = vector.load %arg0[%c0, %c0_0] : memref<8x1xi32, #tpu.memory_space<vmem>>, vector<8x1xi32>
    %1 = tpu.iota {dimensions = array<i32: 1>} : vector<8x16xi32>
    %2 = vector.broadcast %0 : vector<8x1xi32> to vector<8x16xi32>
    %3 = arith.cmpi eq, %2, %1 : vector<8x16xi32>
    %4 = arith.extui %3 : vector<8x16xi1> to vector<8x16xi32>
    %5 = arith.sitofp %4 : vector<8x16xi32> to vector<8x16xf32>
    %c0_1 = arith.constant 0 : index
    %c0_2 = arith.constant 0 : index
    %6 = vector.load %arg4[%c0_1, %c0_2] : memref<104x32xf32, #tpu.memory_space<vmem>>, vector<16x32xf32>
    %cst = arith.constant dense<0.000000e+00> : vector<8x32xf32>
    %7 = tpu.matmul %5, %6, %cst {dimension_numbers = #tpu.dot_dimension_numbers<[1], [0], [0], [1], [0, 0, 1, 1], [], []>} : vector<8x16xf32>, vector<16x32xf32>, vector<8x32xf32> -> vector<8x32xf32>
    %cst_3 = arith.constant 5.65685415 : f32
    %8 = vector.broadcast %cst_3 : f32 to vector<8x32xf32>
    %9 = arith.mulf %7, %8 : vector<8x32xf32>
    %c0_4 = arith.constant 0 : index
    %c0_5 = arith.constant 0 : index
    %10 = vector.load %arg1[%c0_4, %c0_5] : memref<8x1xi32, #tpu.memory_space<vmem>>, vector<8x1xi32>
    %11 = tpu.iota {dimensions = array<i32: 1>} : vector<8x64xi32>
    %12 = vector.broadcast %10 : vector<8x1xi32> to vector<8x64xi32>
    %13 = arith.cmpi eq, %12, %11 : vector<8x64xi32>
    %14 = arith.extui %13 : vector<8x64xi1> to vector<8x64xi32>
    %15 = arith.sitofp %14 : vector<8x64xi32> to vector<8x64xf32>
    %c32 = arith.constant 32 : index
    %c0_6 = arith.constant 0 : index
    %16 = vector.load %arg4[%c32, %c0_6] : memref<104x32xf32, #tpu.memory_space<vmem>>, vector<64x32xf32>
    %cst_7 = arith.constant dense<0.000000e+00> : vector<8x32xf32>
    %17 = tpu.matmul %15, %16, %cst_7 {dimension_numbers = #tpu.dot_dimension_numbers<[1], [0], [0], [1], [0, 0, 1, 1], [], []>} : vector<8x64xf32>, vector<64x32xf32>, vector<8x32xf32> -> vector<8x32xf32>
    %c0_8 = arith.constant 0 : index
    %c0_9 = arith.constant 0 : index
    %18 = vector.load %arg2[%c0_8, %c0_9] : memref<8x1xi32, #tpu.memory_space<vmem>>, vector<8x1xi32>
    %19 = tpu.iota {dimensions = array<i32: 1>} : vector<8x16xi32>
    %20 = vector.broadcast %18 : vector<8x1xi32> to vector<8x16xi32>
    %21 = arith.cmpi eq, %20, %19 : vector<8x16xi32>
    %22 = arith.extui %21 : vector<8x16xi1> to vector<8x16xi32>
    %23 = arith.sitofp %22 : vector<8x16xi32> to vector<8x16xf32>
    %c16 = arith.constant 16 : index
    %c0_10 = arith.constant 0 : index
    %24 = vector.load %arg4[%c16, %c0_10] : memref<104x32xf32, #tpu.memory_space<vmem>>, vector<16x32xf32>
    %cst_11 = arith.constant dense<0.000000e+00> : vector<8x32xf32>
    %25 = tpu.matmul %23, %24, %cst_11 {dimension_numbers = #tpu.dot_dimension_numbers<[1], [0], [0], [1], [0, 0, 1, 1], [], []>} : vector<8x16xf32>, vector<16x32xf32>, vector<8x32xf32> -> vector<8x32xf32>
    %cst_12 = arith.constant 5.65685415 : f32
    %26 = vector.broadcast %cst_12 : f32 to vector<8x32xf32>
    %27 = arith.mulf %25, %26 : vector<8x32xf32>
    %c0_13 = arith.constant 0 : index
    %c0_14 = arith.constant 0 : index
    %28 = vector.load %arg3[%c0_13, %c0_14] : memref<8x1xi32, #tpu.memory_space<vmem>>, vector<8x1xi32>
    %29 = tpu.iota {dimensions = array<i32: 1>} : vector<8x64xi32>
    %30 = vector.broadcast %28 : vector<8x1xi32> to vector<8x64xi32>
    %31 = arith.cmpi eq, %30, %29 : vector<8x64xi32>
    %32 = arith.extui %31 : vector<8x64xi1> to vector<8x64xi32>
    %33 = arith.sitofp %32 : vector<8x64xi32> to vector<8x64xf32>
    %c32_15 = arith.constant 32 : index
    %c0_16 = arith.constant 0 : index
    %34 = vector.load %arg4[%c32_15, %c0_16] : memref<104x32xf32, #tpu.memory_space<vmem>>, vector<64x32xf32>
    %cst_17 = arith.constant dense<0.000000e+00> : vector<8x32xf32>
    %35 = tpu.matmul %33, %34, %cst_17 {dimension_numbers = #tpu.dot_dimension_numbers<[1], [0], [0], [1], [0, 0, 1, 1], [], []>} : vector<8x64xf32>, vector<64x32xf32>, vector<8x32xf32> -> vector<8x32xf32>
    %cst_18 = arith.constant 0.000000e+00 : f32
    %36 = vector.broadcast %cst_18 : f32 to vector<8x32xf32>
    %cst_19 = arith.constant 0.000000e+00 : f32
    %37 = vector.broadcast %cst_19 : f32 to vector<8x1xf32>
    %cst_20 = arith.constant 1.000000e+00 : f32
    %38 = vector.broadcast %cst_20 : f32 to vector<8x1xf32>
    %c0_i32 = arith.constant 0 : i32
    %c8_i32 = arith.constant 8 : i32
    %39 = arith.addi %c0_i32, %c8_i32 : i32
    %c1_i32 = arith.constant 1 : i32
    %40:8 = scf.for %arg10 = %c0_i32 to %39 step %c1_i32 iter_args(%arg11 = %9, %arg12 = %36, %arg13 = %37, %arg14 = %38, %arg15 = %38, %arg16 = %36, %arg17 = %36, %arg18 = %36) -> (vector<8x32xf32>, vector<8x32xf32>, vector<8x1xf32>, vector<8x1xf32>, vector<8x1xf32>, vector<8x32xf32>, vector<8x32xf32>, vector<8x32xf32>)  : i32 {
      %c96_i32 = arith.constant 96 : i32
      %139 = arith.addi %c96_i32, %arg10 : i32
      %140 = arith.index_cast %139 : i32 to index
      %c0_61 = arith.constant 0 : index
      %141 = vector.load %arg4[%140, %c0_61] : memref<104x32xf32, #tpu.memory_space<vmem>>, vector<1x32xf32>
      %142 = arith.addf %arg11, %17 : vector<8x32xf32>
      %143 = vector.broadcast %141 : vector<1x32xf32> to vector<8x32xf32>
      %144 = arith.addf %142, %143 : vector<8x32xf32>
      %145 = arith.subf %144, %arg11 : vector<8x32xf32>
      %146 = vector.broadcast %arg15 : vector<8x1xf32> to vector<8x32xf32>
      %147 = arith.mulf %146, %145 : vector<8x32xf32>
      %148 = arith.addf %arg11, %147 : vector<8x32xf32>
      %c0_62 = arith.constant 0 : index
      %c0_63 = arith.constant 0 : index
      %149 = vector.load %arg7[%c0_62, %c0_63] : memref<34x128xf32, #tpu.memory_space<vmem>>, vector<1x32xf32>
      %c1 = arith.constant 1 : index
      %c0_64 = arith.constant 0 : index
      %150 = vector.load %arg7[%c1, %c0_64] : memref<34x128xf32, #tpu.memory_space<vmem>>, vector<1x32xf32>
      %cst_65 = arith.constant dense<0.000000e+00> : vector<8xf32>
      %151 = vector.multi_reduction <add>, %148, %cst_65 [1] : vector<8x32xf32> to vector<8xf32>
      %152 = vector.shape_cast %151 : vector<8xf32> to vector<8x1xf32>
      %cst_66 = arith.constant 3.200000e+01 : f32
      %153 = vector.broadcast %cst_66 : f32 to vector<8x1xf32>
      %154 = arith.divf %152, %153 : vector<8x1xf32>
      %155 = vector.broadcast %154 : vector<8x1xf32> to vector<8x32xf32>
      %156 = arith.subf %148, %155 : vector<8x32xf32>
      %157 = arith.mulf %156, %156 : vector<8x32xf32>
      %cst_67 = arith.constant dense<0.000000e+00> : vector<8xf32>
      %158 = vector.multi_reduction <add>, %157, %cst_67 [1] : vector<8x32xf32> to vector<8xf32>
      %159 = vector.shape_cast %158 : vector<8xf32> to vector<8x1xf32>
      %cst_68 = arith.constant 3.200000e+01 : f32
      %160 = vector.broadcast %cst_68 : f32 to vector<8x1xf32>
      %161 = arith.divf %159, %160 : vector<8x1xf32>
      %162 = vector.broadcast %154 : vector<8x1xf32> to vector<8x32xf32>
      %163 = arith.subf %148, %162 : vector<8x32xf32>
      %cst_69 = arith.constant 9.99999974E-6 : f32
      %164 = vector.broadcast %cst_69 : f32 to vector<8x1xf32>
      %165 = arith.addf %161, %164 : vector<8x1xf32>
      %166 = math.rsqrt %165 : vector<8x1xf32>
      %167 = vector.broadcast %166 : vector<8x1xf32> to vector<8x32xf32>
      %168 = arith.mulf %163, %167 : vector<8x32xf32>
      %169 = vector.broadcast %149 : vector<1x32xf32> to vector<8x32xf32>
      %170 = arith.mulf %168, %169 : vector<8x32xf32>
      %171 = vector.broadcast %150 : vector<1x32xf32> to vector<8x32xf32>
      %172 = arith.addf %170, %171 : vector<8x32xf32>
      %c0_70 = arith.constant 0 : index
      %c0_71 = arith.constant 0 : index
      %173 = vector.load %arg5[%c0_70, %c0_71] : memref<32x1280xf32, #tpu.memory_space<vmem>>, vector<32x96xf32>
      %cst_72 = arith.constant dense<0.000000e+00> : vector<8x96xf32>
      %174 = tpu.matmul %172, %173, %cst_72 {dimension_numbers = #tpu.dot_dimension_numbers<[1], [0], [0], [1], [0, 0, 1, 1], [], []>} : vector<8x32xf32>, vector<32x96xf32>, vector<8x96xf32> -> vector<8x96xf32>
      %c2 = arith.constant 2 : index
      %c0_73 = arith.constant 0 : index
      %175 = vector.load %arg7[%c2, %c0_73] : memref<34x128xf32, #tpu.memory_space<vmem>>, vector<1x96xf32>
      %176 = vector.broadcast %175 : vector<1x96xf32> to vector<8x96xf32>
      %177 = arith.addf %174, %176 : vector<8x96xf32>
      %178 = vector.extract_strided_slice %177 {offsets = [0, 0], sizes = [8, 32], strides = [1, 1]} : vector<8x96xf32> to vector<8x32xf32>
      %179 = arith.subf %178, %arg16 : vector<8x32xf32>
      %180 = vector.broadcast %arg15 : vector<8x1xf32> to vector<8x32xf32>
      %181 = arith.mulf %180, %179 : vector<8x32xf32>
      %182 = arith.addf %arg16, %181 : vector<8x32xf32>
      %183 = vector.extract_strided_slice %177 {offsets = [0, 32], sizes = [8, 32], strides = [1, 1]} : vector<8x96xf32> to vector<8x32xf32>
      %184 = arith.subf %183, %arg17 : vector<8x32xf32>
      %185 = vector.broadcast %arg15 : vector<8x1xf32> to vector<8x32xf32>
      %186 = arith.mulf %185, %184 : vector<8x32xf32>
      %187 = arith.addf %arg17, %186 : vector<8x32xf32>
      %188 = vector.extract_strided_slice %177 {offsets = [0, 64], sizes = [8, 32], strides = [1, 1]} : vector<8x96xf32> to vector<8x32xf32>
      %189 = arith.subf %188, %arg18 : vector<8x32xf32>
      %190 = vector.broadcast %arg15 : vector<8x1xf32> to vector<8x32xf32>
      %191 = arith.mulf %190, %189 : vector<8x32xf32>
      %192 = arith.addf %arg18, %191 : vector<8x32xf32>
      %c0_74 = arith.constant 0 : index
      %c128 = arith.constant 128 : index
      %193 = vector.load %arg5[%c0_74, %c128] : memref<32x1280xf32, #tpu.memory_space<vmem>>, vector<32x32xf32>
      %c3 = arith.constant 3 : index
      %c0_75 = arith.constant 0 : index
      %194 = vector.load %arg7[%c3, %c0_75] : memref<34x128xf32, #tpu.memory_space<vmem>>, vector<1x32xf32>
      %195 = vector.extract_strided_slice %182 {offsets = [0, 0], sizes = [8, 16], strides = [1, 1]} : vector<8x32xf32> to vector<8x16xf32>
      %196 = vector.extract_strided_slice %187 {offsets = [0, 0], sizes = [8, 16], strides = [1, 1]} : vector<8x32xf32> to vector<8x16xf32>
      %197 = vector.extract_strided_slice %192 {offsets = [0, 0], sizes = [8, 16], strides = [1, 1]} : vector<8x32xf32> to vector<8x16xf32>
      %cst_76 = arith.constant dense<0.000000e+00> : vector<8x8xf32>
      %198 = tpu.matmul %195, %196, %cst_76 {dimension_numbers = #tpu.dot_dimension_numbers<[1], [1], [0], [0], [0, 0, 1, 0], [], []>} : vector<8x16xf32>, vector<8x16xf32>, vector<8x8xf32> -> vector<8x8xf32>
      %cst_77 = arith.constant 2.500000e-01 : f32
      %199 = vector.broadcast %cst_77 : f32 to vector<8x8xf32>
      %200 = arith.mulf %198, %199 : vector<8x8xf32>
      %cst_78 = arith.constant dense<0xFF800000> : vector<8xf32>
      %201 = vector.multi_reduction <maximumf>, %200, %cst_78 [1] : vector<8x8xf32> to vector<8xf32>
      %202 = vector.shape_cast %201 : vector<8xf32> to vector<8x1xf32>
      %203 = vector.broadcast %202 : vector<8x1xf32> to vector<8x8xf32>
      %204 = arith.subf %200, %203 : vector<8x8xf32>
      %205 = math.exp %204 : vector<8x8xf32>
      %cst_79 = arith.constant dense<0.000000e+00> : vector<8xf32>
      %206 = vector.multi_reduction <add>, %205, %cst_79 [1] : vector<8x8xf32> to vector<8xf32>
      %207 = vector.shape_cast %206 : vector<8xf32> to vector<8x1xf32>
      %cst_80 = arith.constant dense<0.000000e+00> : vector<8x16xf32>
      %208 = tpu.matmul %205, %197, %cst_80 {dimension_numbers = #tpu.dot_dimension_numbers<[1], [0], [0], [1], [0, 0, 1, 1], [], []>} : vector<8x8xf32>, vector<8x16xf32>, vector<8x16xf32> -> vector<8x16xf32>
      %209 = tpu.reciprocal %207 {approx = true} : vector<8x1xf32> -> vector<8x1xf32>
      %210 = vector.broadcast %209 : vector<8x1xf32> to vector<8x16xf32>
      %211 = arith.mulf %208, %210 : vector<8x16xf32>
      %212 = vector.extract_strided_slice %193 {offsets = [0, 0], sizes = [16, 32], strides = [1, 1]} : vector<32x32xf32> to vector<16x32xf32>
      %cst_81 = arith.constant dense<0.000000e+00> : vector<8x32xf32>
      %213 = tpu.matmul %211, %212, %cst_81 {dimension_numbers = #tpu.dot_dimension_numbers<[1], [0], [0], [1], [0, 0, 1, 1], [], []>} : vector<8x16xf32>, vector<16x32xf32>, vector<8x32xf32> -> vector<8x32xf32>
      %214 = vector.extract_strided_slice %182 {offsets = [0, 16], sizes = [8, 16], strides = [1, 1]} : vector<8x32xf32> to vector<8x16xf32>
      %215 = vector.extract_strided_slice %187 {offsets = [0, 16], sizes = [8, 16], strides = [1, 1]} : vector<8x32xf32> to vector<8x16xf32>
      %216 = vector.extract_strided_slice %192 {offsets = [0, 16], sizes = [8, 16], strides = [1, 1]} : vector<8x32xf32> to vector<8x16xf32>
      %cst_82 = arith.constant dense<0.000000e+00> : vector<8x8xf32>
      %217 = tpu.matmul %214, %215, %cst_82 {dimension_numbers = #tpu.dot_dimension_numbers<[1], [1], [0], [0], [0, 0, 1, 0], [], []>} : vector<8x16xf32>, vector<8x16xf32>, vector<8x8xf32> -> vector<8x8xf32>
      %cst_83 = arith.constant 2.500000e-01 : f32
      %218 = vector.broadcast %cst_83 : f32 to vector<8x8xf32>
      %219 = arith.mulf %217, %218 : vector<8x8xf32>
      %cst_84 = arith.constant dense<0xFF800000> : vector<8xf32>
      %220 = vector.multi_reduction <maximumf>, %219, %cst_84 [1] : vector<8x8xf32> to vector<8xf32>
      %221 = vector.shape_cast %220 : vector<8xf32> to vector<8x1xf32>
      %222 = vector.broadcast %221 : vector<8x1xf32> to vector<8x8xf32>
      %223 = arith.subf %219, %222 : vector<8x8xf32>
      %224 = math.exp %223 : vector<8x8xf32>
      %cst_85 = arith.constant dense<0.000000e+00> : vector<8xf32>
      %225 = vector.multi_reduction <add>, %224, %cst_85 [1] : vector<8x8xf32> to vector<8xf32>
      %226 = vector.shape_cast %225 : vector<8xf32> to vector<8x1xf32>
      %cst_86 = arith.constant dense<0.000000e+00> : vector<8x16xf32>
      %227 = tpu.matmul %224, %216, %cst_86 {dimension_numbers = #tpu.dot_dimension_numbers<[1], [0], [0], [1], [0, 0, 1, 1], [], []>} : vector<8x8xf32>, vector<8x16xf32>, vector<8x16xf32> -> vector<8x16xf32>
      %228 = tpu.reciprocal %226 {approx = true} : vector<8x1xf32> -> vector<8x1xf32>
      %229 = vector.broadcast %228 : vector<8x1xf32> to vector<8x16xf32>
      %230 = arith.mulf %227, %229 : vector<8x16xf32>
      %231 = vector.extract_strided_slice %193 {offsets = [16, 0], sizes = [16, 32], strides = [1, 1]} : vector<32x32xf32> to vector<16x32xf32>
      %cst_87 = arith.constant dense<0.000000e+00> : vector<8x32xf32>
      %232 = tpu.matmul %230, %231, %cst_87 {dimension_numbers = #tpu.dot_dimension_numbers<[1], [0], [0], [1], [0, 0, 1, 1], [], []>} : vector<8x16xf32>, vector<16x32xf32>, vector<8x32xf32> -> vector<8x32xf32>
      %233 = arith.addf %213, %232 : vector<8x32xf32>
      %234 = vector.broadcast %194 : vector<1x32xf32> to vector<8x32xf32>
      %235 = arith.addf %233, %234 : vector<8x32xf32>
      %236 = arith.addf %148, %235 : vector<8x32xf32>
      %c4 = arith.constant 4 : index
      %c0_88 = arith.constant 0 : index
      %237 = vector.load %arg7[%c4, %c0_88] : memref<34x128xf32, #tpu.memory_space<vmem>>, vector<1x32xf32>
      %c5 = arith.constant 5 : index
      %c0_89 = arith.constant 0 : index
      %238 = vector.load %arg7[%c5, %c0_89] : memref<34x128xf32, #tpu.memory_space<vmem>>, vector<1x32xf32>
      %cst_90 = arith.constant dense<0.000000e+00> : vector<8xf32>
      %239 = vector.multi_reduction <add>, %236, %cst_90 [1] : vector<8x32xf32> to vector<8xf32>
      %240 = vector.shape_cast %239 : vector<8xf32> to vector<8x1xf32>
      %cst_91 = arith.constant 3.200000e+01 : f32
      %241 = vector.broadcast %cst_91 : f32 to vector<8x1xf32>
      %242 = arith.divf %240, %241 : vector<8x1xf32>
      %243 = vector.broadcast %242 : vector<8x1xf32> to vector<8x32xf32>
      %244 = arith.subf %236, %243 : vector<8x32xf32>
      %245 = arith.mulf %244, %244 : vector<8x32xf32>
      %cst_92 = arith.constant dense<0.000000e+00> : vector<8xf32>
      %246 = vector.multi_reduction <add>, %245, %cst_92 [1] : vector<8x32xf32> to vector<8xf32>
      %247 = vector.shape_cast %246 : vector<8xf32> to vector<8x1xf32>
      %cst_93 = arith.constant 3.200000e+01 : f32
      %248 = vector.broadcast %cst_93 : f32 to vector<8x1xf32>
      %249 = arith.divf %247, %248 : vector<8x1xf32>
      %250 = vector.broadcast %242 : vector<8x1xf32> to vector<8x32xf32>
      %251 = arith.subf %236, %250 : vector<8x32xf32>
      %cst_94 = arith.constant 9.99999974E-6 : f32
      %252 = vector.broadcast %cst_94 : f32 to vector<8x1xf32>
      %253 = arith.addf %249, %252 : vector<8x1xf32>
      %254 = math.rsqrt %253 : vector<8x1xf32>
      %255 = vector.broadcast %254 : vector<8x1xf32> to vector<8x32xf32>
      %256 = arith.mulf %251, %255 : vector<8x32xf32>
      %257 = vector.broadcast %237 : vector<1x32xf32> to vector<8x32xf32>
      %258 = arith.mulf %256, %257 : vector<8x32xf32>
      %259 = vector.broadcast %238 : vector<1x32xf32> to vector<8x32xf32>
      %260 = arith.addf %258, %259 : vector<8x32xf32>
      %c0_95 = arith.constant 0 : index
      %c256 = arith.constant 256 : index
      %261 = vector.load %arg5[%c0_95, %c256] : memref<32x1280xf32, #tpu.memory_space<vmem>>, vector<32x128xf32>
      %cst_96 = arith.constant dense<0.000000e+00> : vector<8x128xf32>
      %262 = tpu.matmul %260, %261, %cst_96 {dimension_numbers = #tpu.dot_dimension_numbers<[1], [0], [0], [1], [0, 0, 1, 1], [], []>} : vector<8x32xf32>, vector<32x128xf32>, vector<8x128xf32> -> vector<8x128xf32>
      %c6 = arith.constant 6 : index
      %c0_97 = arith.constant 0 : index
      %263 = vector.load %arg7[%c6, %c0_97] : memref<34x128xf32, #tpu.memory_space<vmem>>, vector<1x128xf32>
      %264 = vector.broadcast %263 : vector<1x128xf32> to vector<8x128xf32>
      %265 = arith.addf %262, %264 : vector<8x128xf32>
      %cst_98 = arith.constant 0.000000e+00 : f32
      %266 = vector.broadcast %cst_98 : f32 to vector<8x128xf32>
      %267 = arith.maximumf %265, %266 : vector<8x128xf32>
      %c0_99 = arith.constant 0 : index
      %c0_100 = arith.constant 0 : index
      %268 = vector.load %arg6[%c0_99, %c0_100] : memref<256x32xf32, #tpu.memory_space<vmem>>, vector<128x32xf32>
      %cst_101 = arith.constant dense<0.000000e+00> : vector<8x32xf32>
      %269 = tpu.matmul %267, %268, %cst_101 {dimension_numbers = #tpu.dot_dimension_numbers<[1], [0], [0], [1], [0, 0, 1, 1], [], []>} : vector<8x128xf32>, vector<128x32xf32>, vector<8x32xf32> -> vector<8x32xf32>
      %c7 = arith.constant 7 : index
      %c0_102 = arith.constant 0 : index
      %270 = vector.load %arg7[%c7, %c0_102] : memref<34x128xf32, #tpu.memory_space<vmem>>, vector<1x32xf32>
      %271 = vector.broadcast %270 : vector<1x32xf32> to vector<8x32xf32>
      %272 = arith.addf %269, %271 : vector<8x32xf32>
      %273 = arith.addf %236, %272 : vector<8x32xf32>
      %274 = arith.subf %273, %148 : vector<8x32xf32>
      %275 = vector.broadcast %arg15 : vector<8x1xf32> to vector<8x32xf32>
      %276 = arith.mulf %275, %274 : vector<8x32xf32>
      %277 = arith.addf %148, %276 : vector<8x32xf32>
      %c10 = arith.constant 10 : index
      %c0_103 = arith.constant 0 : index
      %278 = vector.load %arg7[%c10, %c0_103] : memref<34x128xf32, #tpu.memory_space<vmem>>, vector<1x32xf32>
      %c11 = arith.constant 11 : index
      %c0_104 = arith.constant 0 : index
      %279 = vector.load %arg7[%c11, %c0_104] : memref<34x128xf32, #tpu.memory_space<vmem>>, vector<1x32xf32>
      %c12 = arith.constant 12 : index
      %c0_105 = arith.constant 0 : index
      %280 = vector.load %arg7[%c12, %c0_105] : memref<34x128xf32, #tpu.memory_space<vmem>>, vector<1x32xf32>
      %c13 = arith.constant 13 : index
      %c0_106 = arith.constant 0 : index
      %281 = vector.load %arg7[%c13, %c0_106] : memref<34x128xf32, #tpu.memory_space<vmem>>, vector<1x1xf32>
      %cst_107 = arith.constant dense<0.000000e+00> : vector<8xf32>
      %282 = vector.multi_reduction <add>, %277, %cst_107 [1] : vector<8x32xf32> to vector<8xf32>
      %283 = vector.shape_cast %282 : vector<8xf32> to vector<8x1xf32>
      %cst_108 = arith.constant 3.200000e+01 : f32
      %284 = vector.broadcast %cst_108 : f32 to vector<8x1xf32>
      %285 = arith.divf %283, %284 : vector<8x1xf32>
      %286 = vector.broadcast %285 : vector<8x1xf32> to vector<8x32xf32>
      %287 = arith.subf %277, %286 : vector<8x32xf32>
      %288 = arith.mulf %287, %287 : vector<8x32xf32>
      %cst_109 = arith.constant dense<0.000000e+00> : vector<8xf32>
      %289 = vector.multi_reduction <add>, %288, %cst_109 [1] : vector<8x32xf32> to vector<8xf32>
      %290 = vector.shape_cast %289 : vector<8xf32> to vector<8x1xf32>
      %cst_110 = arith.constant 3.200000e+01 : f32
      %291 = vector.broadcast %cst_110 : f32 to vector<8x1xf32>
      %292 = arith.divf %290, %291 : vector<8x1xf32>
      %293 = vector.broadcast %285 : vector<8x1xf32> to vector<8x32xf32>
      %294 = arith.subf %277, %293 : vector<8x32xf32>
      %cst_111 = arith.constant 9.99999974E-6 : f32
      %295 = vector.broadcast %cst_111 : f32 to vector<8x1xf32>
      %296 = arith.addf %292, %295 : vector<8x1xf32>
      %297 = math.rsqrt %296 : vector<8x1xf32>
      %298 = vector.broadcast %297 : vector<8x1xf32> to vector<8x32xf32>
      %299 = arith.mulf %294, %298 : vector<8x32xf32>
      %300 = vector.broadcast %278 : vector<1x32xf32> to vector<8x32xf32>
      %301 = arith.mulf %299, %300 : vector<8x32xf32>
      %302 = vector.broadcast %279 : vector<1x32xf32> to vector<8x32xf32>
      %303 = arith.addf %301, %302 : vector<8x32xf32>
      %304 = vector.broadcast %280 : vector<1x32xf32> to vector<8x32xf32>
      %305 = arith.mulf %303, %304 : vector<8x32xf32>
      %cst_112 = arith.constant dense<0.000000e+00> : vector<8xf32>
      %306 = vector.multi_reduction <add>, %305, %cst_112 [1] : vector<8x32xf32> to vector<8xf32>
      %307 = vector.shape_cast %306 : vector<8xf32> to vector<8x1xf32>
      %308 = vector.broadcast %281 : vector<1x1xf32> to vector<8x1xf32>
      %309 = arith.addf %307, %308 : vector<8x1xf32>
      %310 = arith.negf %309 : vector<8x1xf32>
      %311 = math.exp %310 : vector<8x1xf32>
      %cst_113 = arith.constant 1.000000e+00 : f32
      %312 = vector.broadcast %cst_113 : f32 to vector<8x1xf32>
      %313 = arith.addf %312, %311 : vector<8x1xf32>
      %314 = arith.divf %312, %313 : vector<8x1xf32>
      %315 = arith.addf %arg13, %314 : vector<8x1xf32>
      %cst_114 = arith.constant 9.900000e-01 : f32
      %316 = vector.broadcast %cst_114 : f32 to vector<8x1xf32>
      %317 = arith.cmpf olt, %315, %316 : vector<8x1xf32>
      %318 = arith.extui %317 : vector<8x1xi1> to vector<8x1xi32>
      %319 = arith.sitofp %318 : vector<8x1xi32> to vector<8x1xf32>
      %c7_i32 = arith.constant 7 : i32
      %320 = arith.cmpi eq, %arg10, %c7_i32 : i32
      %cst_115 = arith.constant 0.000000e+00 : f32
      %321 = vector.broadcast %cst_115 : f32 to vector<8x1xf32>
      %322 = arith.select %320, %321, %319 : vector<8x1xf32>
      %cst_116 = arith.constant 1.000000e+00 : f32
      %323 = vector.broadcast %cst_116 : f32 to vector<8x1xf32>
      %324 = arith.subf %323, %315 : vector<8x1xf32>
      %325 = arith.subf %324, %arg14 : vector<8x1xf32>
      %326 = arith.mulf %322, %325 : vector<8x1xf32>
      %327 = arith.addf %arg14, %326 : vector<8x1xf32>
      %cst_117 = arith.constant 1.000000e+00 : f32
      %328 = vector.broadcast %cst_117 : f32 to vector<8x1xf32>
      %329 = arith.subf %328, %322 : vector<8x1xf32>
      %330 = arith.mulf %329, %327 : vector<8x1xf32>
      %331 = arith.mulf %322, %314 : vector<8x1xf32>
      %332 = arith.addf %330, %331 : vector<8x1xf32>
      %333 = vector.broadcast %332 : vector<8x1xf32> to vector<8x32xf32>
      %334 = arith.mulf %333, %277 : vector<8x32xf32>
      %335 = arith.addf %arg12, %334 : vector<8x32xf32>
      %336 = arith.subf %315, %arg13 : vector<8x1xf32>
      %337 = arith.mulf %arg15, %336 : vector<8x1xf32>
      %338 = arith.addf %arg13, %337 : vector<8x1xf32>
      %339 = arith.subf %327, %arg14 : vector<8x1xf32>
      %340 = arith.mulf %arg15, %339 : vector<8x1xf32>
      %341 = arith.addf %arg14, %340 : vector<8x1xf32>
      %342 = arith.subf %335, %arg12 : vector<8x32xf32>
      %343 = vector.broadcast %arg15 : vector<8x1xf32> to vector<8x32xf32>
      %344 = arith.mulf %343, %342 : vector<8x32xf32>
      %345 = arith.addf %arg12, %344 : vector<8x32xf32>
      %346 = arith.mulf %arg15, %322 : vector<8x1xf32>
      scf.yield %277, %345, %338, %341, %346, %182, %187, %192 : vector<8x32xf32>, vector<8x32xf32>, vector<8x1xf32>, vector<8x1xf32>, vector<8x1xf32>, vector<8x32xf32>, vector<8x32xf32>, vector<8x32xf32>
    }
    %c8_i32_21 = arith.constant 8 : i32
    %c8 = arith.constant 8 : index
    %c0_22 = arith.constant 0 : index
    %41 = vector.load %arg7[%c8, %c0_22] : memref<34x128xf32, #tpu.memory_space<vmem>>, vector<1x32xf32>
    %c9 = arith.constant 9 : index
    %c0_23 = arith.constant 0 : index
    %42 = vector.load %arg7[%c9, %c0_23] : memref<34x128xf32, #tpu.memory_space<vmem>>, vector<1x32xf32>
    %cst_24 = arith.constant dense<0.000000e+00> : vector<8xf32>
    %43 = vector.multi_reduction <add>, %40#1, %cst_24 [1] : vector<8x32xf32> to vector<8xf32>
    %44 = vector.shape_cast %43 : vector<8xf32> to vector<8x1xf32>
    %cst_25 = arith.constant 3.200000e+01 : f32
    %45 = vector.broadcast %cst_25 : f32 to vector<8x1xf32>
    %46 = arith.divf %44, %45 : vector<8x1xf32>
    %47 = vector.broadcast %46 : vector<8x1xf32> to vector<8x32xf32>
    %48 = arith.subf %40#1, %47 : vector<8x32xf32>
    %49 = arith.mulf %48, %48 : vector<8x32xf32>
    %cst_26 = arith.constant dense<0.000000e+00> : vector<8xf32>
    %50 = vector.multi_reduction <add>, %49, %cst_26 [1] : vector<8x32xf32> to vector<8xf32>
    %51 = vector.shape_cast %50 : vector<8xf32> to vector<8x1xf32>
    %cst_27 = arith.constant 3.200000e+01 : f32
    %52 = vector.broadcast %cst_27 : f32 to vector<8x1xf32>
    %53 = arith.divf %51, %52 : vector<8x1xf32>
    %54 = vector.broadcast %46 : vector<8x1xf32> to vector<8x32xf32>
    %55 = arith.subf %40#1, %54 : vector<8x32xf32>
    %cst_28 = arith.constant 9.99999974E-6 : f32
    %56 = vector.broadcast %cst_28 : f32 to vector<8x1xf32>
    %57 = arith.addf %53, %56 : vector<8x1xf32>
    %58 = math.rsqrt %57 : vector<8x1xf32>
    %59 = vector.broadcast %58 : vector<8x1xf32> to vector<8x32xf32>
    %60 = arith.mulf %55, %59 : vector<8x32xf32>
    %61 = vector.broadcast %41 : vector<1x32xf32> to vector<8x32xf32>
    %62 = arith.mulf %60, %61 : vector<8x32xf32>
    %63 = vector.broadcast %42 : vector<1x32xf32> to vector<8x32xf32>
    %64 = arith.addf %62, %63 : vector<8x32xf32>
    %c0_29 = arith.constant 0 : index
    %c768 = arith.constant 768 : index
    %65 = vector.load %arg5[%c0_29, %c768] : memref<32x1280xf32, #tpu.memory_space<vmem>>, vector<32x64xf32>
    %cst_30 = arith.constant dense<0.000000e+00> : vector<8x64xf32>
    %66 = tpu.matmul %64, %65, %cst_30 {dimension_numbers = #tpu.dot_dimension_numbers<[1], [0], [0], [1], [0, 0, 1, 1], [], []>} : vector<8x32xf32>, vector<32x64xf32>, vector<8x64xf32> -> vector<8x64xf32>
    %c21 = arith.constant 21 : index
    %c0_31 = arith.constant 0 : index
    %67 = vector.load %arg7[%c21, %c0_31] : memref<34x128xf32, #tpu.memory_space<vmem>>, vector<1x64xf32>
    %68 = vector.broadcast %67 : vector<1x64xf32> to vector<8x64xf32>
    %69 = arith.addf %66, %68 : vector<8x64xf32>
    %70 = vector.extract_strided_slice %69 {offsets = [0, 0], sizes = [8, 32], strides = [1, 1]} : vector<8x64xf32> to vector<8x32xf32>
    %71 = vector.extract_strided_slice %69 {offsets = [0, 32], sizes = [8, 32], strides = [1, 1]} : vector<8x64xf32> to vector<8x32xf32>
    %72 = tpu.iota {dimensions = array<i32: 0>} : vector<8x8xi32>
    %73 = tpu.iota {dimensions = array<i32: 1>} : vector<8x8xi32>
    %74 = arith.cmpi sle, %73, %72 : vector<8x8xi32>
    %cst_32 = arith.constant 0.000000e+00 : f32
    %cst_33 = arith.constant -1.000000e+09 : f32
    %75 = vector.broadcast %cst_32 : f32 to vector<8x8xf32>
    %76 = vector.broadcast %cst_33 : f32 to vector<8x8xf32>
    %77 = arith.select %74, %75, %76 : vector<8x8xi1>, vector<8x8xf32>
    %cst_34 = arith.constant 0.000000e+00 : f32
    %78 = vector.broadcast %cst_34 : f32 to vector<8x32xf32>
    %cst_35 = arith.constant 0.000000e+00 : f32
    %79 = vector.broadcast %cst_35 : f32 to vector<8x1xf32>
    %cst_36 = arith.constant 1.000000e+00 : f32
    %80 = vector.broadcast %cst_36 : f32 to vector<8x1xf32>
    %c0_i32_37 = arith.constant 0 : i32
    %c8_i32_38 = arith.constant 8 : i32
    %81 = arith.addi %c0_i32_37, %c8_i32_38 : i32
    %c1_i32_39 = arith.constant 1 : i32
    %82:8 = scf.for %arg10 = %c0_i32_37 to %81 step %c1_i32_39 iter_args(%arg11 = %27, %arg12 = %78, %arg13 = %79, %arg14 = %80, %arg15 = %80, %arg16 = %78, %arg17 = %78, %arg18 = %78) -> (vector<8x32xf32>, vector<8x32xf32>, vector<8x1xf32>, vector<8x1xf32>, vector<8x1xf32>, vector<8x32xf32>, vector<8x32xf32>, vector<8x32xf32>)  : i32 {
      %c96_i32 = arith.constant 96 : i32
      %139 = arith.addi %c96_i32, %arg10 : i32
      %140 = arith.index_cast %139 : i32 to index
      %c0_61 = arith.constant 0 : index
      %141 = vector.load %arg4[%140, %c0_61] : memref<104x32xf32, #tpu.memory_space<vmem>>, vector<1x32xf32>
      %142 = arith.addf %arg11, %35 : vector<8x32xf32>
      %143 = vector.broadcast %141 : vector<1x32xf32> to vector<8x32xf32>
      %144 = arith.addf %142, %143 : vector<8x32xf32>
      %145 = arith.subf %144, %arg11 : vector<8x32xf32>
      %146 = vector.broadcast %arg15 : vector<8x1xf32> to vector<8x32xf32>
      %147 = arith.mulf %146, %145 : vector<8x32xf32>
      %148 = arith.addf %arg11, %147 : vector<8x32xf32>
      %c14 = arith.constant 14 : index
      %c0_62 = arith.constant 0 : index
      %149 = vector.load %arg7[%c14, %c0_62] : memref<34x128xf32, #tpu.memory_space<vmem>>, vector<1x32xf32>
      %c15 = arith.constant 15 : index
      %c0_63 = arith.constant 0 : index
      %150 = vector.load %arg7[%c15, %c0_63] : memref<34x128xf32, #tpu.memory_space<vmem>>, vector<1x32xf32>
      %cst_64 = arith.constant dense<0.000000e+00> : vector<8xf32>
      %151 = vector.multi_reduction <add>, %148, %cst_64 [1] : vector<8x32xf32> to vector<8xf32>
      %152 = vector.shape_cast %151 : vector<8xf32> to vector<8x1xf32>
      %cst_65 = arith.constant 3.200000e+01 : f32
      %153 = vector.broadcast %cst_65 : f32 to vector<8x1xf32>
      %154 = arith.divf %152, %153 : vector<8x1xf32>
      %155 = vector.broadcast %154 : vector<8x1xf32> to vector<8x32xf32>
      %156 = arith.subf %148, %155 : vector<8x32xf32>
      %157 = arith.mulf %156, %156 : vector<8x32xf32>
      %cst_66 = arith.constant dense<0.000000e+00> : vector<8xf32>
      %158 = vector.multi_reduction <add>, %157, %cst_66 [1] : vector<8x32xf32> to vector<8xf32>
      %159 = vector.shape_cast %158 : vector<8xf32> to vector<8x1xf32>
      %cst_67 = arith.constant 3.200000e+01 : f32
      %160 = vector.broadcast %cst_67 : f32 to vector<8x1xf32>
      %161 = arith.divf %159, %160 : vector<8x1xf32>
      %162 = vector.broadcast %154 : vector<8x1xf32> to vector<8x32xf32>
      %163 = arith.subf %148, %162 : vector<8x32xf32>
      %cst_68 = arith.constant 9.99999974E-6 : f32
      %164 = vector.broadcast %cst_68 : f32 to vector<8x1xf32>
      %165 = arith.addf %161, %164 : vector<8x1xf32>
      %166 = math.rsqrt %165 : vector<8x1xf32>
      %167 = vector.broadcast %166 : vector<8x1xf32> to vector<8x32xf32>
      %168 = arith.mulf %163, %167 : vector<8x32xf32>
      %169 = vector.broadcast %149 : vector<1x32xf32> to vector<8x32xf32>
      %170 = arith.mulf %168, %169 : vector<8x32xf32>
      %171 = vector.broadcast %150 : vector<1x32xf32> to vector<8x32xf32>
      %172 = arith.addf %170, %171 : vector<8x32xf32>
      %c0_69 = arith.constant 0 : index
      %c384 = arith.constant 384 : index
      %173 = vector.load %arg5[%c0_69, %c384] : memref<32x1280xf32, #tpu.memory_space<vmem>>, vector<32x96xf32>
      %cst_70 = arith.constant dense<0.000000e+00> : vector<8x96xf32>
      %174 = tpu.matmul %172, %173, %cst_70 {dimension_numbers = #tpu.dot_dimension_numbers<[1], [0], [0], [1], [0, 0, 1, 1], [], []>} : vector<8x32xf32>, vector<32x96xf32>, vector<8x96xf32> -> vector<8x96xf32>
      %c16_71 = arith.constant 16 : index
      %c0_72 = arith.constant 0 : index
      %175 = vector.load %arg7[%c16_71, %c0_72] : memref<34x128xf32, #tpu.memory_space<vmem>>, vector<1x96xf32>
      %176 = vector.broadcast %175 : vector<1x96xf32> to vector<8x96xf32>
      %177 = arith.addf %174, %176 : vector<8x96xf32>
      %178 = vector.extract_strided_slice %177 {offsets = [0, 0], sizes = [8, 32], strides = [1, 1]} : vector<8x96xf32> to vector<8x32xf32>
      %179 = arith.subf %178, %arg16 : vector<8x32xf32>
      %180 = vector.broadcast %arg15 : vector<8x1xf32> to vector<8x32xf32>
      %181 = arith.mulf %180, %179 : vector<8x32xf32>
      %182 = arith.addf %arg16, %181 : vector<8x32xf32>
      %183 = vector.extract_strided_slice %177 {offsets = [0, 32], sizes = [8, 32], strides = [1, 1]} : vector<8x96xf32> to vector<8x32xf32>
      %184 = arith.subf %183, %arg17 : vector<8x32xf32>
      %185 = vector.broadcast %arg15 : vector<8x1xf32> to vector<8x32xf32>
      %186 = arith.mulf %185, %184 : vector<8x32xf32>
      %187 = arith.addf %arg17, %186 : vector<8x32xf32>
      %188 = vector.extract_strided_slice %177 {offsets = [0, 64], sizes = [8, 32], strides = [1, 1]} : vector<8x96xf32> to vector<8x32xf32>
      %189 = arith.subf %188, %arg18 : vector<8x32xf32>
      %190 = vector.broadcast %arg15 : vector<8x1xf32> to vector<8x32xf32>
      %191 = arith.mulf %190, %189 : vector<8x32xf32>
      %192 = arith.addf %arg18, %191 : vector<8x32xf32>
      %c0_73 = arith.constant 0 : index
      %c512 = arith.constant 512 : index
      %193 = vector.load %arg5[%c0_73, %c512] : memref<32x1280xf32, #tpu.memory_space<vmem>>, vector<32x32xf32>
      %c17 = arith.constant 17 : index
      %c0_74 = arith.constant 0 : index
      %194 = vector.load %arg7[%c17, %c0_74] : memref<34x128xf32, #tpu.memory_space<vmem>>, vector<1x32xf32>
      %195 = vector.extract_strided_slice %182 {offsets = [0, 0], sizes = [8, 16], strides = [1, 1]} : vector<8x32xf32> to vector<8x16xf32>
      %196 = vector.extract_strided_slice %187 {offsets = [0, 0], sizes = [8, 16], strides = [1, 1]} : vector<8x32xf32> to vector<8x16xf32>
      %197 = vector.extract_strided_slice %192 {offsets = [0, 0], sizes = [8, 16], strides = [1, 1]} : vector<8x32xf32> to vector<8x16xf32>
      %cst_75 = arith.constant dense<0.000000e+00> : vector<8x8xf32>
      %198 = tpu.matmul %195, %196, %cst_75 {dimension_numbers = #tpu.dot_dimension_numbers<[1], [1], [0], [0], [0, 0, 1, 0], [], []>} : vector<8x16xf32>, vector<8x16xf32>, vector<8x8xf32> -> vector<8x8xf32>
      %cst_76 = arith.constant 2.500000e-01 : f32
      %199 = vector.broadcast %cst_76 : f32 to vector<8x8xf32>
      %200 = arith.mulf %198, %199 : vector<8x8xf32>
      %201 = arith.addf %200, %77 : vector<8x8xf32>
      %cst_77 = arith.constant dense<0xFF800000> : vector<8xf32>
      %202 = vector.multi_reduction <maximumf>, %201, %cst_77 [1] : vector<8x8xf32> to vector<8xf32>
      %203 = vector.shape_cast %202 : vector<8xf32> to vector<8x1xf32>
      %204 = vector.broadcast %203 : vector<8x1xf32> to vector<8x8xf32>
      %205 = arith.subf %201, %204 : vector<8x8xf32>
      %206 = math.exp %205 : vector<8x8xf32>
      %cst_78 = arith.constant dense<0.000000e+00> : vector<8xf32>
      %207 = vector.multi_reduction <add>, %206, %cst_78 [1] : vector<8x8xf32> to vector<8xf32>
      %208 = vector.shape_cast %207 : vector<8xf32> to vector<8x1xf32>
      %cst_79 = arith.constant dense<0.000000e+00> : vector<8x16xf32>
      %209 = tpu.matmul %206, %197, %cst_79 {dimension_numbers = #tpu.dot_dimension_numbers<[1], [0], [0], [1], [0, 0, 1, 1], [], []>} : vector<8x8xf32>, vector<8x16xf32>, vector<8x16xf32> -> vector<8x16xf32>
      %210 = tpu.reciprocal %208 {approx = true} : vector<8x1xf32> -> vector<8x1xf32>
      %211 = vector.broadcast %210 : vector<8x1xf32> to vector<8x16xf32>
      %212 = arith.mulf %209, %211 : vector<8x16xf32>
      %213 = vector.extract_strided_slice %193 {offsets = [0, 0], sizes = [16, 32], strides = [1, 1]} : vector<32x32xf32> to vector<16x32xf32>
      %cst_80 = arith.constant dense<0.000000e+00> : vector<8x32xf32>
      %214 = tpu.matmul %212, %213, %cst_80 {dimension_numbers = #tpu.dot_dimension_numbers<[1], [0], [0], [1], [0, 0, 1, 1], [], []>} : vector<8x16xf32>, vector<16x32xf32>, vector<8x32xf32> -> vector<8x32xf32>
      %215 = vector.extract_strided_slice %182 {offsets = [0, 16], sizes = [8, 16], strides = [1, 1]} : vector<8x32xf32> to vector<8x16xf32>
      %216 = vector.extract_strided_slice %187 {offsets = [0, 16], sizes = [8, 16], strides = [1, 1]} : vector<8x32xf32> to vector<8x16xf32>
      %217 = vector.extract_strided_slice %192 {offsets = [0, 16], sizes = [8, 16], strides = [1, 1]} : vector<8x32xf32> to vector<8x16xf32>
      %cst_81 = arith.constant dense<0.000000e+00> : vector<8x8xf32>
      %218 = tpu.matmul %215, %216, %cst_81 {dimension_numbers = #tpu.dot_dimension_numbers<[1], [1], [0], [0], [0, 0, 1, 0], [], []>} : vector<8x16xf32>, vector<8x16xf32>, vector<8x8xf32> -> vector<8x8xf32>
      %cst_82 = arith.constant 2.500000e-01 : f32
      %219 = vector.broadcast %cst_82 : f32 to vector<8x8xf32>
      %220 = arith.mulf %218, %219 : vector<8x8xf32>
      %221 = arith.addf %220, %77 : vector<8x8xf32>
      %cst_83 = arith.constant dense<0xFF800000> : vector<8xf32>
      %222 = vector.multi_reduction <maximumf>, %221, %cst_83 [1] : vector<8x8xf32> to vector<8xf32>
      %223 = vector.shape_cast %222 : vector<8xf32> to vector<8x1xf32>
      %224 = vector.broadcast %223 : vector<8x1xf32> to vector<8x8xf32>
      %225 = arith.subf %221, %224 : vector<8x8xf32>
      %226 = math.exp %225 : vector<8x8xf32>
      %cst_84 = arith.constant dense<0.000000e+00> : vector<8xf32>
      %227 = vector.multi_reduction <add>, %226, %cst_84 [1] : vector<8x8xf32> to vector<8xf32>
      %228 = vector.shape_cast %227 : vector<8xf32> to vector<8x1xf32>
      %cst_85 = arith.constant dense<0.000000e+00> : vector<8x16xf32>
      %229 = tpu.matmul %226, %217, %cst_85 {dimension_numbers = #tpu.dot_dimension_numbers<[1], [0], [0], [1], [0, 0, 1, 1], [], []>} : vector<8x8xf32>, vector<8x16xf32>, vector<8x16xf32> -> vector<8x16xf32>
      %230 = tpu.reciprocal %228 {approx = true} : vector<8x1xf32> -> vector<8x1xf32>
      %231 = vector.broadcast %230 : vector<8x1xf32> to vector<8x16xf32>
      %232 = arith.mulf %229, %231 : vector<8x16xf32>
      %233 = vector.extract_strided_slice %193 {offsets = [16, 0], sizes = [16, 32], strides = [1, 1]} : vector<32x32xf32> to vector<16x32xf32>
      %cst_86 = arith.constant dense<0.000000e+00> : vector<8x32xf32>
      %234 = tpu.matmul %232, %233, %cst_86 {dimension_numbers = #tpu.dot_dimension_numbers<[1], [0], [0], [1], [0, 0, 1, 1], [], []>} : vector<8x16xf32>, vector<16x32xf32>, vector<8x32xf32> -> vector<8x32xf32>
      %235 = arith.addf %214, %234 : vector<8x32xf32>
      %236 = vector.broadcast %194 : vector<1x32xf32> to vector<8x32xf32>
      %237 = arith.addf %235, %236 : vector<8x32xf32>
      %238 = arith.addf %148, %237 : vector<8x32xf32>
      %239 = arith.subf %238, %148 : vector<8x32xf32>
      %240 = vector.broadcast %arg15 : vector<8x1xf32> to vector<8x32xf32>
      %241 = arith.mulf %240, %239 : vector<8x32xf32>
      %242 = arith.addf %148, %241 : vector<8x32xf32>
      %c18 = arith.constant 18 : index
      %c0_87 = arith.constant 0 : index
      %243 = vector.load %arg7[%c18, %c0_87] : memref<34x128xf32, #tpu.memory_space<vmem>>, vector<1x32xf32>
      %c19 = arith.constant 19 : index
      %c0_88 = arith.constant 0 : index
      %244 = vector.load %arg7[%c19, %c0_88] : memref<34x128xf32, #tpu.memory_space<vmem>>, vector<1x32xf32>
      %cst_89 = arith.constant dense<0.000000e+00> : vector<8xf32>
      %245 = vector.multi_reduction <add>, %242, %cst_89 [1] : vector<8x32xf32> to vector<8xf32>
      %246 = vector.shape_cast %245 : vector<8xf32> to vector<8x1xf32>
      %cst_90 = arith.constant 3.200000e+01 : f32
      %247 = vector.broadcast %cst_90 : f32 to vector<8x1xf32>
      %248 = arith.divf %246, %247 : vector<8x1xf32>
      %249 = vector.broadcast %248 : vector<8x1xf32> to vector<8x32xf32>
      %250 = arith.subf %242, %249 : vector<8x32xf32>
      %251 = arith.mulf %250, %250 : vector<8x32xf32>
      %cst_91 = arith.constant dense<0.000000e+00> : vector<8xf32>
      %252 = vector.multi_reduction <add>, %251, %cst_91 [1] : vector<8x32xf32> to vector<8xf32>
      %253 = vector.shape_cast %252 : vector<8xf32> to vector<8x1xf32>
      %cst_92 = arith.constant 3.200000e+01 : f32
      %254 = vector.broadcast %cst_92 : f32 to vector<8x1xf32>
      %255 = arith.divf %253, %254 : vector<8x1xf32>
      %256 = vector.broadcast %248 : vector<8x1xf32> to vector<8x32xf32>
      %257 = arith.subf %242, %256 : vector<8x32xf32>
      %cst_93 = arith.constant 9.99999974E-6 : f32
      %258 = vector.broadcast %cst_93 : f32 to vector<8x1xf32>
      %259 = arith.addf %255, %258 : vector<8x1xf32>
      %260 = math.rsqrt %259 : vector<8x1xf32>
      %261 = vector.broadcast %260 : vector<8x1xf32> to vector<8x32xf32>
      %262 = arith.mulf %257, %261 : vector<8x32xf32>
      %263 = vector.broadcast %243 : vector<1x32xf32> to vector<8x32xf32>
      %264 = arith.mulf %262, %263 : vector<8x32xf32>
      %265 = vector.broadcast %244 : vector<1x32xf32> to vector<8x32xf32>
      %266 = arith.addf %264, %265 : vector<8x32xf32>
      %c0_94 = arith.constant 0 : index
      %c640 = arith.constant 640 : index
      %267 = vector.load %arg5[%c0_94, %c640] : memref<32x1280xf32, #tpu.memory_space<vmem>>, vector<32x32xf32>
      %cst_95 = arith.constant dense<0.000000e+00> : vector<8x32xf32>
      %268 = tpu.matmul %266, %267, %cst_95 {dimension_numbers = #tpu.dot_dimension_numbers<[1], [0], [0], [1], [0, 0, 1, 1], [], []>} : vector<8x32xf32>, vector<32x32xf32>, vector<8x32xf32> -> vector<8x32xf32>
      %c20 = arith.constant 20 : index
      %c0_96 = arith.constant 0 : index
      %269 = vector.load %arg7[%c20, %c0_96] : memref<34x128xf32, #tpu.memory_space<vmem>>, vector<1x32xf32>
      %270 = vector.broadcast %269 : vector<1x32xf32> to vector<8x32xf32>
      %271 = arith.addf %268, %270 : vector<8x32xf32>
      %c0_97 = arith.constant 0 : index
      %c896 = arith.constant 896 : index
      %272 = vector.load %arg5[%c0_97, %c896] : memref<32x1280xf32, #tpu.memory_space<vmem>>, vector<32x32xf32>
      %c22 = arith.constant 22 : index
      %c0_98 = arith.constant 0 : index
      %273 = vector.load %arg7[%c22, %c0_98] : memref<34x128xf32, #tpu.memory_space<vmem>>, vector<1x32xf32>
      %274 = vector.extract_strided_slice %271 {offsets = [0, 0], sizes = [8, 16], strides = [1, 1]} : vector<8x32xf32> to vector<8x16xf32>
      %275 = vector.extract_strided_slice %70 {offsets = [0, 0], sizes = [8, 16], strides = [1, 1]} : vector<8x32xf32> to vector<8x16xf32>
      %276 = vector.extract_strided_slice %71 {offsets = [0, 0], sizes = [8, 16], strides = [1, 1]} : vector<8x32xf32> to vector<8x16xf32>
      %cst_99 = arith.constant dense<0.000000e+00> : vector<8x8xf32>
      %277 = tpu.matmul %274, %275, %cst_99 {dimension_numbers = #tpu.dot_dimension_numbers<[1], [1], [0], [0], [0, 0, 1, 0], [], []>} : vector<8x16xf32>, vector<8x16xf32>, vector<8x8xf32> -> vector<8x8xf32>
      %cst_100 = arith.constant 2.500000e-01 : f32
      %278 = vector.broadcast %cst_100 : f32 to vector<8x8xf32>
      %279 = arith.mulf %277, %278 : vector<8x8xf32>
      %cst_101 = arith.constant dense<0xFF800000> : vector<8xf32>
      %280 = vector.multi_reduction <maximumf>, %279, %cst_101 [1] : vector<8x8xf32> to vector<8xf32>
      %281 = vector.shape_cast %280 : vector<8xf32> to vector<8x1xf32>
      %282 = vector.broadcast %281 : vector<8x1xf32> to vector<8x8xf32>
      %283 = arith.subf %279, %282 : vector<8x8xf32>
      %284 = math.exp %283 : vector<8x8xf32>
      %cst_102 = arith.constant dense<0.000000e+00> : vector<8xf32>
      %285 = vector.multi_reduction <add>, %284, %cst_102 [1] : vector<8x8xf32> to vector<8xf32>
      %286 = vector.shape_cast %285 : vector<8xf32> to vector<8x1xf32>
      %cst_103 = arith.constant dense<0.000000e+00> : vector<8x16xf32>
      %287 = tpu.matmul %284, %276, %cst_103 {dimension_numbers = #tpu.dot_dimension_numbers<[1], [0], [0], [1], [0, 0, 1, 1], [], []>} : vector<8x8xf32>, vector<8x16xf32>, vector<8x16xf32> -> vector<8x16xf32>
      %288 = tpu.reciprocal %286 {approx = true} : vector<8x1xf32> -> vector<8x1xf32>
      %289 = vector.broadcast %288 : vector<8x1xf32> to vector<8x16xf32>
      %290 = arith.mulf %287, %289 : vector<8x16xf32>
      %291 = vector.extract_strided_slice %272 {offsets = [0, 0], sizes = [16, 32], strides = [1, 1]} : vector<32x32xf32> to vector<16x32xf32>
      %cst_104 = arith.constant dense<0.000000e+00> : vector<8x32xf32>
      %292 = tpu.matmul %290, %291, %cst_104 {dimension_numbers = #tpu.dot_dimension_numbers<[1], [0], [0], [1], [0, 0, 1, 1], [], []>} : vector<8x16xf32>, vector<16x32xf32>, vector<8x32xf32> -> vector<8x32xf32>
      %293 = vector.extract_strided_slice %271 {offsets = [0, 16], sizes = [8, 16], strides = [1, 1]} : vector<8x32xf32> to vector<8x16xf32>
      %294 = vector.extract_strided_slice %70 {offsets = [0, 16], sizes = [8, 16], strides = [1, 1]} : vector<8x32xf32> to vector<8x16xf32>
      %295 = vector.extract_strided_slice %71 {offsets = [0, 16], sizes = [8, 16], strides = [1, 1]} : vector<8x32xf32> to vector<8x16xf32>
      %cst_105 = arith.constant dense<0.000000e+00> : vector<8x8xf32>
      %296 = tpu.matmul %293, %294, %cst_105 {dimension_numbers = #tpu.dot_dimension_numbers<[1], [1], [0], [0], [0, 0, 1, 0], [], []>} : vector<8x16xf32>, vector<8x16xf32>, vector<8x8xf32> -> vector<8x8xf32>
      %cst_106 = arith.constant 2.500000e-01 : f32
      %297 = vector.broadcast %cst_106 : f32 to vector<8x8xf32>
      %298 = arith.mulf %296, %297 : vector<8x8xf32>
      %cst_107 = arith.constant dense<0xFF800000> : vector<8xf32>
      %299 = vector.multi_reduction <maximumf>, %298, %cst_107 [1] : vector<8x8xf32> to vector<8xf32>
      %300 = vector.shape_cast %299 : vector<8xf32> to vector<8x1xf32>
      %301 = vector.broadcast %300 : vector<8x1xf32> to vector<8x8xf32>
      %302 = arith.subf %298, %301 : vector<8x8xf32>
      %303 = math.exp %302 : vector<8x8xf32>
      %cst_108 = arith.constant dense<0.000000e+00> : vector<8xf32>
      %304 = vector.multi_reduction <add>, %303, %cst_108 [1] : vector<8x8xf32> to vector<8xf32>
      %305 = vector.shape_cast %304 : vector<8xf32> to vector<8x1xf32>
      %cst_109 = arith.constant dense<0.000000e+00> : vector<8x16xf32>
      %306 = tpu.matmul %303, %295, %cst_109 {dimension_numbers = #tpu.dot_dimension_numbers<[1], [0], [0], [1], [0, 0, 1, 1], [], []>} : vector<8x8xf32>, vector<8x16xf32>, vector<8x16xf32> -> vector<8x16xf32>
      %307 = tpu.reciprocal %305 {approx = true} : vector<8x1xf32> -> vector<8x1xf32>
      %308 = vector.broadcast %307 : vector<8x1xf32> to vector<8x16xf32>
      %309 = arith.mulf %306, %308 : vector<8x16xf32>
      %310 = vector.extract_strided_slice %272 {offsets = [16, 0], sizes = [16, 32], strides = [1, 1]} : vector<32x32xf32> to vector<16x32xf32>
      %cst_110 = arith.constant dense<0.000000e+00> : vector<8x32xf32>
      %311 = tpu.matmul %309, %310, %cst_110 {dimension_numbers = #tpu.dot_dimension_numbers<[1], [0], [0], [1], [0, 0, 1, 1], [], []>} : vector<8x16xf32>, vector<16x32xf32>, vector<8x32xf32> -> vector<8x32xf32>
      %312 = arith.addf %292, %311 : vector<8x32xf32>
      %313 = vector.broadcast %273 : vector<1x32xf32> to vector<8x32xf32>
      %314 = arith.addf %312, %313 : vector<8x32xf32>
      %315 = arith.addf %242, %314 : vector<8x32xf32>
      %c23 = arith.constant 23 : index
      %c0_111 = arith.constant 0 : index
      %316 = vector.load %arg7[%c23, %c0_111] : memref<34x128xf32, #tpu.memory_space<vmem>>, vector<1x32xf32>
      %c24 = arith.constant 24 : index
      %c0_112 = arith.constant 0 : index
      %317 = vector.load %arg7[%c24, %c0_112] : memref<34x128xf32, #tpu.memory_space<vmem>>, vector<1x32xf32>
      %cst_113 = arith.constant dense<0.000000e+00> : vector<8xf32>
      %318 = vector.multi_reduction <add>, %315, %cst_113 [1] : vector<8x32xf32> to vector<8xf32>
      %319 = vector.shape_cast %318 : vector<8xf32> to vector<8x1xf32>
      %cst_114 = arith.constant 3.200000e+01 : f32
      %320 = vector.broadcast %cst_114 : f32 to vector<8x1xf32>
      %321 = arith.divf %319, %320 : vector<8x1xf32>
      %322 = vector.broadcast %321 : vector<8x1xf32> to vector<8x32xf32>
      %323 = arith.subf %315, %322 : vector<8x32xf32>
      %324 = arith.mulf %323, %323 : vector<8x32xf32>
      %cst_115 = arith.constant dense<0.000000e+00> : vector<8xf32>
      %325 = vector.multi_reduction <add>, %324, %cst_115 [1] : vector<8x32xf32> to vector<8xf32>
      %326 = vector.shape_cast %325 : vector<8xf32> to vector<8x1xf32>
      %cst_116 = arith.constant 3.200000e+01 : f32
      %327 = vector.broadcast %cst_116 : f32 to vector<8x1xf32>
      %328 = arith.divf %326, %327 : vector<8x1xf32>
      %329 = vector.broadcast %321 : vector<8x1xf32> to vector<8x32xf32>
      %330 = arith.subf %315, %329 : vector<8x32xf32>
      %cst_117 = arith.constant 9.99999974E-6 : f32
      %331 = vector.broadcast %cst_117 : f32 to vector<8x1xf32>
      %332 = arith.addf %328, %331 : vector<8x1xf32>
      %333 = math.rsqrt %332 : vector<8x1xf32>
      %334 = vector.broadcast %333 : vector<8x1xf32> to vector<8x32xf32>
      %335 = arith.mulf %330, %334 : vector<8x32xf32>
      %336 = vector.broadcast %316 : vector<1x32xf32> to vector<8x32xf32>
      %337 = arith.mulf %335, %336 : vector<8x32xf32>
      %338 = vector.broadcast %317 : vector<1x32xf32> to vector<8x32xf32>
      %339 = arith.addf %337, %338 : vector<8x32xf32>
      %c0_118 = arith.constant 0 : index
      %c1024 = arith.constant 1024 : index
      %340 = vector.load %arg5[%c0_118, %c1024] : memref<32x1280xf32, #tpu.memory_space<vmem>>, vector<32x128xf32>
      %cst_119 = arith.constant dense<0.000000e+00> : vector<8x128xf32>
      %341 = tpu.matmul %339, %340, %cst_119 {dimension_numbers = #tpu.dot_dimension_numbers<[1], [0], [0], [1], [0, 0, 1, 1], [], []>} : vector<8x32xf32>, vector<32x128xf32>, vector<8x128xf32> -> vector<8x128xf32>
      %c25 = arith.constant 25 : index
      %c0_120 = arith.constant 0 : index
      %342 = vector.load %arg7[%c25, %c0_120] : memref<34x128xf32, #tpu.memory_space<vmem>>, vector<1x128xf32>
      %343 = vector.broadcast %342 : vector<1x128xf32> to vector<8x128xf32>
      %344 = arith.addf %341, %343 : vector<8x128xf32>
      %cst_121 = arith.constant 0.000000e+00 : f32
      %345 = vector.broadcast %cst_121 : f32 to vector<8x128xf32>
      %346 = arith.maximumf %344, %345 : vector<8x128xf32>
      %c128 = arith.constant 128 : index
      %c0_122 = arith.constant 0 : index
      %347 = vector.load %arg6[%c128, %c0_122] : memref<256x32xf32, #tpu.memory_space<vmem>>, vector<128x32xf32>
      %cst_123 = arith.constant dense<0.000000e+00> : vector<8x32xf32>
      %348 = tpu.matmul %346, %347, %cst_123 {dimension_numbers = #tpu.dot_dimension_numbers<[1], [0], [0], [1], [0, 0, 1, 1], [], []>} : vector<8x128xf32>, vector<128x32xf32>, vector<8x32xf32> -> vector<8x32xf32>
      %c26 = arith.constant 26 : index
      %c0_124 = arith.constant 0 : index
      %349 = vector.load %arg7[%c26, %c0_124] : memref<34x128xf32, #tpu.memory_space<vmem>>, vector<1x32xf32>
      %350 = vector.broadcast %349 : vector<1x32xf32> to vector<8x32xf32>
      %351 = arith.addf %348, %350 : vector<8x32xf32>
      %352 = arith.addf %315, %351 : vector<8x32xf32>
      %353 = arith.subf %352, %242 : vector<8x32xf32>
      %354 = vector.broadcast %arg15 : vector<8x1xf32> to vector<8x32xf32>
      %355 = arith.mulf %354, %353 : vector<8x32xf32>
      %356 = arith.addf %242, %355 : vector<8x32xf32>
      %c29 = arith.constant 29 : index
      %c0_125 = arith.constant 0 : index
      %357 = vector.load %arg7[%c29, %c0_125] : memref<34x128xf32, #tpu.memory_space<vmem>>, vector<1x32xf32>
      %c30 = arith.constant 30 : index
      %c0_126 = arith.constant 0 : index
      %358 = vector.load %arg7[%c30, %c0_126] : memref<34x128xf32, #tpu.memory_space<vmem>>, vector<1x32xf32>
      %c31 = arith.constant 31 : index
      %c0_127 = arith.constant 0 : index
      %359 = vector.load %arg7[%c31, %c0_127] : memref<34x128xf32, #tpu.memory_space<vmem>>, vector<1x32xf32>
      %c32_128 = arith.constant 32 : index
      %c0_129 = arith.constant 0 : index
      %360 = vector.load %arg7[%c32_128, %c0_129] : memref<34x128xf32, #tpu.memory_space<vmem>>, vector<1x1xf32>
      %cst_130 = arith.constant dense<0.000000e+00> : vector<8xf32>
      %361 = vector.multi_reduction <add>, %356, %cst_130 [1] : vector<8x32xf32> to vector<8xf32>
      %362 = vector.shape_cast %361 : vector<8xf32> to vector<8x1xf32>
      %cst_131 = arith.constant 3.200000e+01 : f32
      %363 = vector.broadcast %cst_131 : f32 to vector<8x1xf32>
      %364 = arith.divf %362, %363 : vector<8x1xf32>
      %365 = vector.broadcast %364 : vector<8x1xf32> to vector<8x32xf32>
      %366 = arith.subf %356, %365 : vector<8x32xf32>
      %367 = arith.mulf %366, %366 : vector<8x32xf32>
      %cst_132 = arith.constant dense<0.000000e+00> : vector<8xf32>
      %368 = vector.multi_reduction <add>, %367, %cst_132 [1] : vector<8x32xf32> to vector<8xf32>
      %369 = vector.shape_cast %368 : vector<8xf32> to vector<8x1xf32>
      %cst_133 = arith.constant 3.200000e+01 : f32
      %370 = vector.broadcast %cst_133 : f32 to vector<8x1xf32>
      %371 = arith.divf %369, %370 : vector<8x1xf32>
      %372 = vector.broadcast %364 : vector<8x1xf32> to vector<8x32xf32>
      %373 = arith.subf %356, %372 : vector<8x32xf32>
      %cst_134 = arith.constant 9.99999974E-6 : f32
      %374 = vector.broadcast %cst_134 : f32 to vector<8x1xf32>
      %375 = arith.addf %371, %374 : vector<8x1xf32>
      %376 = math.rsqrt %375 : vector<8x1xf32>
      %377 = vector.broadcast %376 : vector<8x1xf32> to vector<8x32xf32>
      %378 = arith.mulf %373, %377 : vector<8x32xf32>
      %379 = vector.broadcast %357 : vector<1x32xf32> to vector<8x32xf32>
      %380 = arith.mulf %378, %379 : vector<8x32xf32>
      %381 = vector.broadcast %358 : vector<1x32xf32> to vector<8x32xf32>
      %382 = arith.addf %380, %381 : vector<8x32xf32>
      %383 = vector.broadcast %359 : vector<1x32xf32> to vector<8x32xf32>
      %384 = arith.mulf %382, %383 : vector<8x32xf32>
      %cst_135 = arith.constant dense<0.000000e+00> : vector<8xf32>
      %385 = vector.multi_reduction <add>, %384, %cst_135 [1] : vector<8x32xf32> to vector<8xf32>
      %386 = vector.shape_cast %385 : vector<8xf32> to vector<8x1xf32>
      %387 = vector.broadcast %360 : vector<1x1xf32> to vector<8x1xf32>
      %388 = arith.addf %386, %387 : vector<8x1xf32>
      %389 = arith.negf %388 : vector<8x1xf32>
      %390 = math.exp %389 : vector<8x1xf32>
      %cst_136 = arith.constant 1.000000e+00 : f32
      %391 = vector.broadcast %cst_136 : f32 to vector<8x1xf32>
      %392 = arith.addf %391, %390 : vector<8x1xf32>
      %393 = arith.divf %391, %392 : vector<8x1xf32>
      %394 = arith.addf %arg13, %393 : vector<8x1xf32>
      %cst_137 = arith.constant 9.900000e-01 : f32
      %395 = vector.broadcast %cst_137 : f32 to vector<8x1xf32>
      %396 = arith.cmpf olt, %394, %395 : vector<8x1xf32>
      %397 = arith.extui %396 : vector<8x1xi1> to vector<8x1xi32>
      %398 = arith.sitofp %397 : vector<8x1xi32> to vector<8x1xf32>
      %c7_i32 = arith.constant 7 : i32
      %399 = arith.cmpi eq, %arg10, %c7_i32 : i32
      %cst_138 = arith.constant 0.000000e+00 : f32
      %400 = vector.broadcast %cst_138 : f32 to vector<8x1xf32>
      %401 = arith.select %399, %400, %398 : vector<8x1xf32>
      %cst_139 = arith.constant 1.000000e+00 : f32
      %402 = vector.broadcast %cst_139 : f32 to vector<8x1xf32>
      %403 = arith.subf %402, %394 : vector<8x1xf32>
      %404 = arith.subf %403, %arg14 : vector<8x1xf32>
      %405 = arith.mulf %401, %404 : vector<8x1xf32>
      %406 = arith.addf %arg14, %405 : vector<8x1xf32>
      %cst_140 = arith.constant 1.000000e+00 : f32
      %407 = vector.broadcast %cst_140 : f32 to vector<8x1xf32>
      %408 = arith.subf %407, %401 : vector<8x1xf32>
      %409 = arith.mulf %408, %406 : vector<8x1xf32>
      %410 = arith.mulf %401, %393 : vector<8x1xf32>
      %411 = arith.addf %409, %410 : vector<8x1xf32>
      %412 = vector.broadcast %411 : vector<8x1xf32> to vector<8x32xf32>
      %413 = arith.mulf %412, %356 : vector<8x32xf32>
      %414 = arith.addf %arg12, %413 : vector<8x32xf32>
      %415 = arith.subf %394, %arg13 : vector<8x1xf32>
      %416 = arith.mulf %arg15, %415 : vector<8x1xf32>
      %417 = arith.addf %arg13, %416 : vector<8x1xf32>
      %418 = arith.subf %406, %arg14 : vector<8x1xf32>
      %419 = arith.mulf %arg15, %418 : vector<8x1xf32>
      %420 = arith.addf %arg14, %419 : vector<8x1xf32>
      %421 = arith.subf %414, %arg12 : vector<8x32xf32>
      %422 = vector.broadcast %arg15 : vector<8x1xf32> to vector<8x32xf32>
      %423 = arith.mulf %422, %421 : vector<8x32xf32>
      %424 = arith.addf %arg12, %423 : vector<8x32xf32>
      %425 = arith.mulf %arg15, %401 : vector<8x1xf32>
      scf.yield %356, %424, %417, %420, %425, %182, %187, %192 : vector<8x32xf32>, vector<8x32xf32>, vector<8x1xf32>, vector<8x1xf32>, vector<8x1xf32>, vector<8x32xf32>, vector<8x32xf32>, vector<8x32xf32>
    }
    %c8_i32_40 = arith.constant 8 : i32
    %c27 = arith.constant 27 : index
    %c0_41 = arith.constant 0 : index
    %83 = vector.load %arg7[%c27, %c0_41] : memref<34x128xf32, #tpu.memory_space<vmem>>, vector<1x32xf32>
    %c28 = arith.constant 28 : index
    %c0_42 = arith.constant 0 : index
    %84 = vector.load %arg7[%c28, %c0_42] : memref<34x128xf32, #tpu.memory_space<vmem>>, vector<1x32xf32>
    %cst_43 = arith.constant dense<0.000000e+00> : vector<8xf32>
    %85 = vector.multi_reduction <add>, %82#1, %cst_43 [1] : vector<8x32xf32> to vector<8xf32>
    %86 = vector.shape_cast %85 : vector<8xf32> to vector<8x1xf32>
    %cst_44 = arith.constant 3.200000e+01 : f32
    %87 = vector.broadcast %cst_44 : f32 to vector<8x1xf32>
    %88 = arith.divf %86, %87 : vector<8x1xf32>
    %89 = vector.broadcast %88 : vector<8x1xf32> to vector<8x32xf32>
    %90 = arith.subf %82#1, %89 : vector<8x32xf32>
    %91 = arith.mulf %90, %90 : vector<8x32xf32>
    %cst_45 = arith.constant dense<0.000000e+00> : vector<8xf32>
    %92 = vector.multi_reduction <add>, %91, %cst_45 [1] : vector<8x32xf32> to vector<8xf32>
    %93 = vector.shape_cast %92 : vector<8xf32> to vector<8x1xf32>
    %cst_46 = arith.constant 3.200000e+01 : f32
    %94 = vector.broadcast %cst_46 : f32 to vector<8x1xf32>
    %95 = arith.divf %93, %94 : vector<8x1xf32>
    %96 = vector.broadcast %88 : vector<8x1xf32> to vector<8x32xf32>
    %97 = arith.subf %82#1, %96 : vector<8x32xf32>
    %cst_47 = arith.constant 9.99999974E-6 : f32
    %98 = vector.broadcast %cst_47 : f32 to vector<8x1xf32>
    %99 = arith.addf %95, %98 : vector<8x1xf32>
    %100 = math.rsqrt %99 : vector<8x1xf32>
    %101 = vector.broadcast %100 : vector<8x1xf32> to vector<8x32xf32>
    %102 = arith.mulf %97, %101 : vector<8x32xf32>
    %103 = vector.broadcast %83 : vector<1x32xf32> to vector<8x32xf32>
    %104 = arith.mulf %102, %103 : vector<8x32xf32>
    %105 = vector.broadcast %84 : vector<1x32xf32> to vector<8x32xf32>
    %106 = arith.addf %104, %105 : vector<8x32xf32>
    %c0_48 = arith.constant 0 : index
    %c1152 = arith.constant 1152 : index
    %107 = vector.load %arg5[%c0_48, %c1152] : memref<32x1280xf32, #tpu.memory_space<vmem>>, vector<32x16xf32>
    %cst_49 = arith.constant dense<0.000000e+00> : vector<8x16xf32>
    %108 = tpu.matmul %106, %107, %cst_49 {dimension_numbers = #tpu.dot_dimension_numbers<[1], [0], [0], [1], [0, 0, 1, 1], [], []>} : vector<8x32xf32>, vector<32x16xf32>, vector<8x16xf32> -> vector<8x16xf32>
    %c33 = arith.constant 33 : index
    %c0_50 = arith.constant 0 : index
    %109 = vector.load %arg7[%c33, %c0_50] : memref<34x128xf32, #tpu.memory_space<vmem>>, vector<1x16xf32>
    %110 = vector.broadcast %109 : vector<1x16xf32> to vector<8x16xf32>
    %111 = arith.addf %108, %110 : vector<8x16xf32>
    %cst_51 = arith.constant dense<0xFF800000> : vector<8xf32>
    %112 = vector.multi_reduction <maximumf>, %111, %cst_51 [1] : vector<8x16xf32> to vector<8xf32>
    %113 = vector.shape_cast %112 : vector<8xf32> to vector<8x1xf32>
    %114 = vector.broadcast %113 : vector<8x1xf32> to vector<8x16xf32>
    %115 = arith.subf %111, %114 : vector<8x16xf32>
    %116 = math.exp %115 : vector<8x16xf32>
    %cst_52 = arith.constant dense<0.000000e+00> : vector<8xf32>
    %117 = vector.multi_reduction <add>, %116, %cst_52 [1] : vector<8x16xf32> to vector<8xf32>
    %118 = vector.shape_cast %117 : vector<8xf32> to vector<8x1xf32>
    %119 = math.log %118 : vector<8x1xf32>
    %120 = vector.broadcast %119 : vector<8x1xf32> to vector<8x16xf32>
    %121 = arith.subf %115, %120 : vector<8x16xf32>
    %c0_53 = arith.constant 0 : index
    %c0_54 = arith.constant 0 : index
    %122 = vector.load %arg8[%c0_53, %c0_54] : memref<8x16xf32, #tpu.memory_space<vmem>>, vector<8x16xf32>
    tpu.vector_store %arg8[%c0_53, %c0_54], %121 {strides = array<i32>} : memref<8x16xf32, #tpu.memory_space<vmem>>, vector<8x16xf32>,
    %123 = vector.shape_cast %40#3 : vector<8x1xf32> to vector<1x8x1xf32>
    %cst_55 = arith.constant dense<0.000000e+00> : vector<1xf32>
    %124 = vector.multi_reduction <add>, %123, %cst_55 [1, 2] : vector<1x8x1xf32> to vector<1xf32>
    %125 = vector.shape_cast %124 : vector<1xf32> to vector<1x1x1xf32>
    %126 = vector.extract %125[0, 0, 0] : f32 from vector<1x1x1xf32>
    %127 = vector.broadcast %126 : f32 to vector<1x1xf32>
    %128 = vector.shape_cast %82#3 : vector<8x1xf32> to vector<1x8x1xf32>
    %cst_56 = arith.constant dense<0.000000e+00> : vector<1xf32>
    %129 = vector.multi_reduction <add>, %128, %cst_56 [1, 2] : vector<1x8x1xf32> to vector<1xf32>
    %130 = vector.shape_cast %129 : vector<1xf32> to vector<1x1x1xf32>
    %131 = vector.extract %130[0, 0, 0] : f32 from vector<1x1x1xf32>
    %132 = vector.broadcast %131 : f32 to vector<1x1xf32>
    %133 = arith.addf %127, %132 : vector<1x1xf32>
    %cst_57 = arith.constant 1.600000e+01 : f32
    %134 = vector.broadcast %cst_57 : f32 to vector<1x1xf32>
    %135 = arith.divf %133, %134 : vector<1x1xf32>
    %cst_58 = arith.constant 0.00999999977 : f32
    %136 = vector.broadcast %cst_58 : f32 to vector<1x1xf32>
    %137 = arith.mulf %135, %136 : vector<1x1xf32>
    %c0_59 = arith.constant 0 : index
    %c0_60 = arith.constant 0 : index
    %138 = vector.load %arg9[%c0_59, %c0_60] : memref<1x1xf32, #tpu.memory_space<vmem>>, vector<1x1xf32>
    tpu.vector_store %arg9[%c0_59, %c0_60], %137 {strides = array<i32>} : memref<1x1xf32, #tpu.memory_space<vmem>>, vector<1x1xf32>,
    return
  }
}

</mosaic_0001>

<bundles_post_ra>
// kernel: utransformer_forward.1
= control target key start
LH: loop header
LB: loop body
LE: loop exit
PB: predicated region body
PF: predicated region fallthrough
CT: control target
= control target key end

     0   :  { %15 = vsyncpa [#allocation3], 0  ;;  %v4037_v2 = vmov 0   ;;  %s4972_s0 = inlined_call_operand.vmem [shape: s32[8,1], index: 0, kind: input, shape index: {}]   ;;  %s4973_s1 = inlined_call_operand.vmem [shape: s32[8,1], index: 1, kind: input, shape index: {}]   ;;  %s4974_s2 = inlined_call_operand.vmem [shape: s32[8,1], index: 2, kind: input, shape index: {}]   ;;  %s4975_s3 = inlined_call_operand.vmem [shape: s32[8,1], index: 3, kind: input, shape index: {}]   ;;  %s4976_s4 = inlined_call_operand.vmem [shape: f32[104,32], index: 4, kind: input, shape index: {}]   ;;  %s4977_s5 = inlined_call_operand.vmem [shape: f32[32,1280], index: 5, kind: input, shape index: {}]   ;;  %s4978_s6 = inlined_call_operand.vmem [shape: f32[256,32], index: 6, kind: input, shape index: {}]   ;;  %s4979_s7 = inlined_call_operand.vmem [shape: f32[34,128], index: 7, kind: input, shape index: {}]   ;;  %s4980_s8 = inlined_call_operand.hbm [shape: f32[8,16], index: 8, kind: output, shape index: {0}]   ;;  %s4981_s9 = inlined_call_operand.hbm [shape: f32[1,1], index: 9, kind: output, shape index: {1}]  }
   0x1   :  { %v33_v0 = vld [vmem:[%s4972_s0] sm:$0xff]  ;;  %3821 = vset.pattern.permute.xlu0 %v4037_v2  ;;  %3822 = vset.pattern.permute.xlu1 %v4037_v2 }
   0x2   :  { %v119_v1 = vld [vmem:[%s4973_s1] sm:$0xff] }
   0x3   :  { %16 = vsyncpa [#allocation5], 0  ;;  %v43_v3 = vld [vmem:[%s4976_s4 + $0x8] sm:$0xff]  ;;  %37 = vperm.xlu0 %3821, %v33_v0   ;;  %121 = vperm.xlu1 %3822, %v119_v1   ;;  %v216_v4 = vld [vmem:[%s4976_s4 + $0x18] sm:$0xff]  ;;  %v4038_v7 = vmov 0.0   ;;  %vm4039_vm0 = vmmov 0   ;;  %v34_v10 = vlaneseq }
   0x4   :  { %v208_v5 = vld [vmem:[%s4974_s2] sm:$0xff]  ;;  %3382 = vmatprep.subr.mxu1 %v4038_v7  ;;  %3386 = vmatprep.mubr.msk.f32.mxu1 %vm4039_vm0, %v4038_v7  ;;  %v215_v9 = vld [vmem:[%s4976_s4 + $0x10] sm:$0xff]  ;;  %vm44_vm1 = vcmask 130048   ;;  %v133_v13 = vld [vmem:[%s4976_s4 + $0x58] sm:$0xff]  ;;  %vm134_vm5 = vcmask 523264   ;;  %v4204_v38 = vmov 0.0  }
   0x5   :  { %v291_v6 = vld [vmem:[%s4975_s3] sm:$0xff]  ;;  %3383 = vmatpush3.msra.mxu1 %v43_v3  ;;  %3408 = vmatprep.subr.mxu0 %v4038_v7  ;;  %v4144_v11 = vand.u32 127, %v34_v10  ;;  %v132_v15 = vld [vmem:[%s4976_s4 + $0x50] sm:$0xff]  ;;  %v131_v17 = vld [vmem:[%s4976_s4 + $0x48] sm:$0xff]  ;;  %v4206_v39 = vmov 1.0   ;;  %v4208_v40 = vmov 1.0  }
   0x6   :  { %v42_v8 = vld [vmem:[%s4976_s4] sm:$0xff]  ;;  %3384 = vmatprep.subr.mxu1 %v4038_v7  ;;  %3409 = vmatpush3.msra.mxu0 %v216_v4  ;;  %v129_v20 = vld [vmem:[%s4976_s4 + $0x38] sm:$0xff]  ;;  %v128_v22 = vld [vmem:[%s4976_s4 + $0x30] sm:$0xff]  ;;  %v4210_v41 = vmov 0.0   ;;  %v4212_v42 = vmov 0.0   ;;  %s4216_s16 = smov 0  }
   0x7   :  { %210 = vperm.xlu0 %3821, %v208_v5   ;;  %293 = vperm.xlu1 %3822, %v291_v6   ;;  %v130_v19 = vld [vmem:[%s4976_s4 + $0x40] sm:$0xff]  ;;  %v127_v23 = vld [vmem:[%s4976_s4 + $0x28] sm:$0xff] }
   0x8   :  { %3385 = vmatpush3.msra.mxu1 %v42_v8  ;;  %3410 = vmatprep.subr.mxu0 %v4038_v7  ;;  %v126_v24 = vld [vmem:[%s4976_s4 + $0x20] sm:$0xff] }
   0x9   :  { %3389 = vmatprep.subr.mxu1 %v4038_v7  ;;  %3411 = vmatpush3.msra.mxu0 %v215_v9 }
   0xa   :  { %3412 = vmatprep.mubr.msk.f32.mxu0 %vm4039_vm0, %v4038_v7  ;;  %3415 = vmatprep.subr.mxu0 %v4038_v7 }
  0x7e   :  { %v38_v12 = vpop.permute.xlu0 %37  ;;  %v122_v21 = vpop.permute.xlu1 %121 }
  0x7f   :  { %vm39_vm2 = vcmp.eq.s32.totalorder %v38_v12, %v4144_v11  ;;  %vm123_vm4 = vcmp.eq.s32.totalorder %v122_v21, %v4144_v11 }
  0x80   :  { %v3166_v14 = vsel %vm39_vm2, 1.0, %v4038_v7  ;;  %v3168_v25 = vsel %vm123_vm4, 1.0, %v4038_v7 }
  0x81   :  { %3387 = vmatmul.mubr.msk.f32.vlgmr.msra.gmra.mxu1 %vm44_vm1, %v3166_v14 }
  0x82   :  { %3390 = vmatpush3.msra.mxu1 %v133_v13  ;;  %v211_v16 = vpop.permute.xlu0 %210  ;;  %3405 = vmatprep.mubr.msk.f32.mxu1 %vm4039_vm0, %v4038_v7  ;;  %v294_v26 = vpop.permute.xlu1 %293 }
  0x83   :  { %3391 = vmatprep.subr.mxu1 %v4038_v7  ;;  %vm212_vm3 = vcmp.eq.s32.totalorder %v211_v16, %v4144_v11  ;;  %vm295_vm6 = vcmp.eq.s32.totalorder %v294_v26, %v4144_v11 }
  0x84   :  { %v3170_v18 = vsel %vm212_vm3, 1.0, %v4038_v7  ;;  %3392 = vmatpush3.msra.mxu1 %v132_v15  ;;  %v3172_v27 = vsel %vm295_vm6, 1.0, %v4038_v7 }
  0x85   :  { %3393 = vmatprep.subr.mxu1 %v4038_v7  ;;  %3413 = vmatmul.mubr.msk.f32.vlgmr.msra.gmra.mxu0 %vm44_vm1, %v3170_v18 }
  0x86   :  { %3394 = vmatpush3.msra.mxu1 %v131_v17  ;;  %3416 = vmatpush3.msra.mxu0 %v133_v13 }
  0x87   :  { %3395 = vmatprep.subr.mxu1 %v4038_v7  ;;  %3417 = vmatprep.subr.mxu0 %v4038_v7 }
  0x88   :  { %3396 = vmatpush3.msra.mxu1 %v130_v19  ;;  %3418 = vmatpush3.msra.mxu0 %v132_v15 }
  0x89   :  { %3397 = vmatprep.subr.mxu1 %v4038_v7  ;;  %3419 = vmatprep.subr.mxu0 %v4038_v7 }
  0x8a   :  { %3398 = vmatpush3.msra.mxu1 %v129_v20  ;;  %3420 = vmatpush3.msra.mxu0 %v131_v17 }
  0x8b   :  { %3399 = vmatprep.subr.mxu1 %v4038_v7  ;;  %3421 = vmatprep.subr.mxu0 %v4038_v7 }
  0x8c   :  { %3400 = vmatpush3.msra.mxu1 %v128_v22  ;;  %3422 = vmatpush3.msra.mxu0 %v130_v19 }
  0x8d   :  { %3401 = vmatprep.subr.mxu1 %v4038_v7  ;;  %3423 = vmatprep.subr.mxu0 %v4038_v7 }
  0x8e   :  { %3402 = vmatpush3.msra.mxu1 %v127_v23  ;;  %3424 = vmatpush3.msra.mxu0 %v129_v20 }
  0x8f   :  { %3403 = vmatprep.subr.mxu1 %v4038_v7  ;;  %3425 = vmatprep.subr.mxu0 %v4038_v7 }
  0x90   :  { %3404 = vmatpush3.msra.mxu1 %v126_v24  ;;  %3426 = vmatpush3.msra.mxu0 %v128_v22 }
  0x91   :  { %3406 = vmatmul.mubr.msk.f32.vlgmr.msra.gmra.mxu1 %vm134_vm5, %v3168_v25  ;;  %3427 = vmatprep.subr.mxu0 %v4038_v7 }
  0x92   :  { %3428 = vmatpush3.msra.mxu0 %v127_v23  ;;  %3431 = vmatprep.mubr.msk.f32.mxu0 %vm4039_vm0, %v4038_v7 }
  0x93   :  { %3429 = vmatprep.subr.mxu0 %v4038_v7 }
  0x94   :  { %3430 = vmatpush3.msra.mxu0 %v126_v24 }
  0x95   :  { %3432 = vmatmul.mubr.msk.f32.vlgmr.msra.gmra.mxu0 %vm134_vm5, %v3172_v27 }
 0x141   :  { %v114_v28 = vpop.f32.mrf.mxu1 }
 0x142   :  { %v118_v29 = vmul.f32 5.656854, %v114_v28  }
 0x143   :  { %v3388_v30 = vpop.f32.mrf.mxu1 }
 0x145   :  { %v286_v31 = vpop.f32.mrf.mxu0 }
 0x146   :  { %v4198_v32 = vmul.f32 5.656854, %v286_v31  }
 0x147   :  { %v3414_v33 = vpop.f32.mrf.mxu0 }
 0x151   :  { %v4200_v34 = vpop.f32.mrf.mxu1 }
 0x153   :  { %v3407_v35 = vpop.f32.mrf.mxu1 }
 0x155   :  { %v4202_v36 = vpop.f32.mrf.mxu0 }
 0x157   :  { %v3433_v37 = vpop.f32.mrf.mxu0 }
 0x158 LB: > { %v4040_v43 = vmov 0   ;;  %s3104_s18 = scalar_lea.vmem %s4976_s4, %s4007_s16  ;;  %v388_v44 = vadd.f32 %v4003_v29, %v4200_v34  ;;  %vm404_vm7 = vcmask 261120   ;;  %v432_v57 = vld [vmem:[%s4977_s5 + $0xf0] sm:$0xff]  ;;  %v4041_v58 = vmov 0.0   ;;  %v431_v59 = vld [vmem:[%s4977_s5 + $0xa0] sm:$0xff]  ;;  %s4043_s30 = smov 64   ;;  %s4007_s16 = sphi %s4216_s16, %s376_s16   ;;  %v4003_v29 = vphi %v118_v29, %v4446_v29   ;;  %v3999_v42 = vphi %v4212_v42, %v4985_v42   ;;  %v3995_v41 = vphi %v4210_v41, %v1286_v41   ;;  %v3991_v40 = vphi %v4208_v40, %v4984_v40   ;;  %v3987_v39 = vphi %v4206_v39, %v4983_v39   ;;  %v3983_v38 = vphi %v4204_v38, %v4289_v38  }
 0x159   : > { %3823 = vset.pattern.permute.xlu0 %v4040_v43  ;;  %3824 = vset.pattern.permute.xlu1 %v4040_v43  ;;  %v3175_v45 = vld [vmem:[%s3104_s18 + $0x60] ss:$0 sm:$0xff]  ;;  %vm4042_vm8 = vmmov 0   ;;  %v430_v60 = vld [vmem:[%s4977_s5 + $0x50] sm:$0xff]  ;;  %v3177_v4 = vld [vmem:[%s4979_s7 + $0x1] ss:$0 sm:$0xff] }
 0x15a   : > { %397 = vperm.xlu0 %3823, %v3987_v39   ;;  %v393_v46 = vadd.f32 %v3175_v45, %v388_v44  ;;  %3434 = vmatprep.subr.mxu0 %v4041_v58  ;;  %v429_v61 = vld [vmem:[%s4977_s5] sm:$0xff]  ;;  %s4044_s10 = smov 96   ;;  %s4045_s11 = smov 80   ;;  %vm604_vm9 = vcmask 64512   ;;  %v521_v30 = vld [vmem:[%s4977_s5 + $0x58] sm:$0xff]  ;;  %v520_v31 = vld [vmem:[%s4977_s5 + $0x8] sm:$0xff] }
 0x15b   : > { %3442 = vmatprep.mubr.msk.f32.mxu0 %vm4042_vm8, %v4041_v58  ;;  %3435 = vmatpush3.msra.mxu0 %v432_v57  ;;  %v3176_v2 = vld [vmem:[%s4979_s7] ss:$0 sm:$0xff]  ;;  %v3178_v8 = vld [vmem:[%s4979_s7 + $0x2] ss:$0 sm:$0xff]  ;;  %s4046_s12 = smov 112   ;;  %s4047_s13 = smov 48  }
 0x15c   : > { %v394_v47 = vsub.f32 %v393_v46, %v4003_v29  ;;  %3472 = vmatprep.subr.mxu1 %v4041_v58  ;;  %3436 = vmatprep.subr.mxu0 %v4041_v58  ;;  %p1264_p0 = scmp.eq.s32.totalorder %s4007_s16, 7  ;;  %s376_s16 = sadd.s32 1, %s4007_s16  }
 0x15d   : > { %3476 = vmatprep.mubr.msk.f32.mxu1 %vm4042_vm8, %v4041_v58  ;;  %3437 = vmatpush3.msra.mxu0 %v431_v59  ;;  %v523_v59 = vld [vmem:[%s4977_s5 + $0xf8] sm:$0xff]  ;;  %p373_p1 = scmp.ge.s32.totalorder %s376_s16, 8  }
 0x15e   : > { %3438 = vmatprep.subr.mxu0 %v4041_v58  ;;  %3473 = vmatpush3.msra.mxu1 %v521_v30  ;;  %v1125_v30 = vld [vmem:[%s4978_s6 + $0x30] sm:$0xff]  ;;  %s1265_s29 = scalar_select %p1264_p0, 1, 0 }
 0x15f   : > { %3439 = vmatpush3.msra.mxu0 %v430_v60  ;;  %3474 = vmatprep.subr.mxu1 %v4041_v58  ;;  %v522_v60 = vld [vmem:[%s4977_s5 + $0xa8] sm:$0xff]  ;;  %v1323_v34 = vld [vmem:[%s4977_s5 + $0xd0] sm:$0xff] (%p373_p1)  ;;  %s4551_s2 = smov (%p373_p1), 0  }
 0x160   : > { %3440 = vmatprep.subr.mxu0 %v4041_v58  ;;  %3475 = vmatpush3.msra.mxu1 %v520_v31  ;;  %v1124_v31 = vld [vmem:[%s4978_s6 + $0x28] sm:$0xff] }
 0x161   : > { %3441 = vmatpush3.msra.mxu0 %v429_v61  ;;  %3490 = vmatprep.subr.mxu1 %v4041_v58 }
 0x162   : > { %3445 = vmatprep.subr.mxu0 %v4041_v58 }
 0x1d5   : > { %v4243_v48 = vpop.permute.xlu0 %397 }
 0x1d6   : > { %v400_v49 = vmul.f32 %v4243_v48, %v394_v47 }
 0x1d8   : > { %v4246_v50 = vadd.f32 %v4003_v29, %v400_v49 }
 0x1da   : > { %v405_v51 = vsel %vm404_vm7, %v4246_v50, 0.0 }
 0x1db   : > { %406 = vadd.xlane.f32.xlu0 %v405_v51 }
 0x264   : > { %v407_v52 = vpop.xlane.xlu0 %406 }
 0x265   : > { %v409_v53 = vmul.f32 0.03125, %v407_v52 }
 0x267   : > { %v410_v54 = vsub.f32 %v4246_v50, %v409_v53 }
 0x269   : > { %v411_v55 = vmul.f32 %v410_v54, %v410_v54 }
 0x26b   : > { %v412_v56 = vsel %vm404_vm7, %v411_v55, 0.0 }
 0x26c   : > { %413 = vadd.xlane.f32.xlu1 %v412_v56 }
 0x2f5   : > { %v414_v62 = vpop.xlane.xlu1 %413 }
 0x2f6   : > { %v415_v63 = vmul.f32 0.03125, %v414_v62 }
 0x2f8   : > { %v416_v0 = vadd.f32 1e-05, %v415_v63 }
 0x2fa   : > { %3825 = vrsqrt.f32 %v416_v0 }
 0x307   : > { %v3826_v1 = vpop.eup %3825 }
 0x308   : > { %v418_v3 = vmul.f32 %v3826_v1, %v410_v54 }
 0x30a   : > { %v423_v5 = vmul.f32 %v3176_v2, %v418_v3  ;;  %v3188_v2 = vld [vmem:[%s4979_s7 + $0x3] ss:$0 sm:$0xff] }
 0x30c   : > { %v428_v6 = vadd.f32 %v3177_v4, %v423_v5 }
 0x30e   : > { %3443 = vmatmul.mubr.msk.f32.vlgmr.msra.gmra.mxu0 %vm404_vm7, %v428_v6 }
 0x30f   : > { %3447 = vmatprep.mubr.msk.f32.mxu0 %vm4042_vm8, %v4041_v58 }
 0x3ce   : > { %v507_v9 = vpop.f32.mrf.mxu0 }
 0x3cf   : > { %v508_v12 = vadd.f32 %v3178_v8, %v507_v9 }
 0x3d0   : > { %v3444_v13 = vpop.f32.mrf.mxu0 }
 0x3d1   : > { %v511_v14 = vsub.f32 %v508_v12, %v3983_v38 }
 0x3d3   : > { %v512_v15 = vmul.f32 %v511_v14, %v4243_v48 }
 0x3d5   : > { %v4289_v38 = vadd.f32 %v3983_v38, %v512_v15  }
 0x3d7   : > { %615 = vrot.lane.b32.xlu0 %v4289_v38, %s4043_s30  ;;  %526 = vrot.lane.b32.xlu1 %v4289_v38, %s4044_s10 }
 0x3db   : > { %695 = vrot.lane.b32.xlu0 %v4289_v38, %s4045_s11 }
 0x449   : > { %v527_v16 = vpop.permute.xlu1 %526  ;;  %v616_v17 = vpop.permute.xlu0 %615 }
 0x44a   : > { %3446 = vmatpush3.xpose.msk.msra.mxu0 %vm44_vm1, %v527_v16 }
 0x44b   : > { %3450 = vmatprep.subr.mxu0 %v4041_v58 }
 0x44d   : > { %3448 = vmatmul.mubr.msk.f32.vlgmr.msra.gmra.mxu0 %vm44_vm1, %v4289_v38  ;;  %v696_v27 = vpop.permute.xlu0 %695 }
 0x44e   : > { %3451 = vmatpush3.msra.mxu0 %v616_v17  ;;  %3452 = vmatprep.mubr.msk.f32.mxu0 %vm4042_vm8, %v4041_v58  ;;  %v1039_v17 = vld [vmem:[%s4977_s5 + $0x100] sm:$0xff] }
 0x44f   : > { %3455 = vmatprep.subr.mxu0 %v4041_v58 }
 0x50d   : > { %v599_v18 = vpop.f32.mrf.mxu0 }
 0x50e   : > { %v603_v19 = vmul.f32 0.25, %v599_v18  ;;  %v1038_v18 = vld [vmem:[%s4977_s5 + $0xb0] sm:$0xff] }
 0x50f   : > { %v3449_v20 = vpop.f32.mrf.mxu0 }
 0x510   : > { %v605_v21 = vsel %vm604_vm9, %v603_v19, -inf  ;;  %v1036_v20 = vld [vmem:[%s4977_s5 + $0x10] sm:$0xff] }
 0x511   : > { %606 = vmax.xlane.f32.xlu1 %v605_v21  ;;  %v1134_v21 = vld [vmem:[%s4978_s6 + $0x78] sm:$0xff] }
 0x522   : > { %693 = vrot.lane.b32.xlu1 %v4289_v38, %s4046_s12 }
 0x526   : > { %781 = vrot.lane.b32.xlu1 %v4289_v38, %s4047_s13  ;;  %v1322_v38 = vld [vmem:[%s4977_s5 + $0x80] sm:$0xff] (%p373_p1) }
 0x59a   : > { %v607_v22 = vpop.xlane.xlu1 %606 }
 0x59b   : > { %v608_v23 = vsub.f32 %v603_v19, %v607_v22  ;;  %v1037_v19 = vld [vmem:[%s4977_s5 + $0x60] sm:$0xff]  ;;  %v1133_v22 = vld [vmem:[%s4978_s6 + $0x70] sm:$0xff] }
 0x59d   : > { %v609_v24 = vmul.f32 1.442695, %v608_v23  ;;  %v1132_v23 = vld [vmem:[%s4978_s6 + $0x68] sm:$0xff] }
 0x59e   : > { %v694_v25 = vpop.permute.xlu1 %693 }
 0x59f   : > { %3827 = vpow2.f32 %v609_v24  ;;  %v1131_v24 = vld [vmem:[%s4978_s6 + $0x60] sm:$0xff] }
 0x5a2   : > { %v782_v29 = vpop.permute.xlu1 %781 }
 0x5ac   : > { %v3828_v26 = vpop.eup %3827 }
 0x5ad   : > { %3453 = vmatmul.mubr.msk.f32.vlgmr.msra.gmra.mxu0 %vm604_vm9, %v3828_v26  ;;  %v611_v28 = vsel %vm604_vm9, %v3828_v26, 0.0  ;;  %v1129_v26 = vld [vmem:[%s4978_s6 + $0x50] sm:$0xff] }
 0x5ae   : > { %3456 = vmatpush3.xpose.msk.msra.mxu0 %vm44_vm1, %v696_v27  ;;  %612 = vadd.xlane.f32.xlu1 %v611_v28  ;;  %v1128_v27 = vld [vmem:[%s4978_s6 + $0x48] sm:$0xff]  ;;  %v1127_v28 = vld [vmem:[%s4978_s6 + $0x40] sm:$0xff] }
 0x5af   : > { %3457 = vmatprep.mubr.msk.f32.mxu0 %vm4042_vm8, %v4041_v58  ;;  %3460 = vmatprep.subr.mxu0 %v4041_v58 }
 0x5b1   : > { %3458 = vmatmul.mubr.msk.f32.vlgmr.msra.gmra.mxu0 %vm44_vm1, %v694_v25  ;;  %v1130_v25 = vld [vmem:[%s4978_s6 + $0x58] sm:$0xff] }
 0x5b2   : > { %3461 = vmatpush3.msra.mxu0 %v782_v29  ;;  %3462 = vmatprep.mubr.msk.f32.mxu0 %vm4042_vm8, %v4041_v58  ;;  %v1126_v29 = vld [vmem:[%s4978_s6 + $0x38] sm:$0xff] }
 0x5b3   : > { %3465 = vmatprep.subr.mxu0 %v4041_v58 }
 0x637   : > { %v613_v33 = vpop.xlane.xlu1 %612 }
 0x638   : > { %3829 = vrcp.f32 %v613_v33  ;;  %v1123_v33 = vld [vmem:[%s4978_s6 + $0x20] sm:$0xff] }
 0x645   : > { %v3830_v35 = vpop.eup %3829 }
 0x66d   : > { %v687_v37 = vpop.f32.mrf.mxu0 }
 0x66e   : > { %v692_v43 = vmul.f32 %v3830_v35, %v687_v37  ;;  %v1122_v35 = vld [vmem:[%s4978_s6 + $0x18] sm:$0xff] }
 0x66f   : > { %v3454_v44 = vpop.f32.mrf.mxu0 }
 0x670   : > { %3477 = vmatmul.mubr.msk.f32.vlgmr.msra.gmra.mxu1 %vm44_vm1, %v692_v43 }
 0x671   : > { %v767_v45 = vpop.f32.mrf.mxu0  ;;  %3522 = vmatprep.mubr.msk.f32.mxu1 %vm4042_vm8, %v4041_v58  ;;  %3491 = vmatpush3.msra.mxu1 %v1134_v21  ;;  %v3196_v21 = vld [vmem:[%s4979_s7 + $0xc] ss:$0 sm:$0xff] }
 0x672   : > { %v771_v46 = vmul.f32 0.25, %v767_v45  ;;  %3492 = vmatprep.subr.mxu1 %v4041_v58 }
 0x673   : > { %v3459_v47 = vpop.f32.mrf.mxu0  ;;  %3493 = vmatpush3.msra.mxu1 %v1133_v22 }
 0x674   : > { %v772_v49 = vsel %vm604_vm9, %v771_v46, -inf  ;;  %3494 = vmatprep.subr.mxu1 %v4041_v58 }
 0x675   : > { %773 = vmax.xlane.f32.xlu0 %v772_v49  ;;  %3495 = vmatpush3.msra.mxu1 %v1132_v23  ;;  %v3190_v49 = vld [vmem:[%s4979_s7 + $0x5] ss:$0 sm:$0xff] }
 0x676   : > { %3496 = vmatprep.subr.mxu1 %v4041_v58 }
 0x677   : > { %3497 = vmatpush3.msra.mxu1 %v1131_v24 }
 0x678   : > { %3498 = vmatprep.subr.mxu1 %v4041_v58 }
 0x679   : > { %3499 = vmatpush3.msra.mxu1 %v1130_v25  ;;  %v3197_v25 = vld [vmem:[%s4979_s7 + $0xd] ss:$0 sm:$0xff] }
 0x67a   : > { %3500 = vmatprep.subr.mxu1 %v4041_v58 }
 0x67b   : > { %3501 = vmatpush3.msra.mxu1 %v1129_v26 }
 0x67c   : > { %3502 = vmatprep.subr.mxu1 %v4041_v58 }
 0x67d   : > { %3503 = vmatpush3.msra.mxu1 %v1128_v27 }
 0x67e   : > { %3504 = vmatprep.subr.mxu1 %v4041_v58 }
 0x67f   : > { %3505 = vmatpush3.msra.mxu1 %v1127_v28 }
 0x680   : > { %3506 = vmatprep.subr.mxu1 %v4041_v58 }
 0x681   : > { %3507 = vmatpush3.msra.mxu1 %v1126_v29 }
 0x682   : > { %3508 = vmatprep.subr.mxu1 %v4041_v58 }
 0x683   : > { %3509 = vmatpush3.msra.mxu1 %v1125_v30 }
 0x684   : > { %3510 = vmatprep.subr.mxu1 %v4041_v58 }
 0x685   : > { %3511 = vmatpush3.msra.mxu1 %v1124_v31 }
 0x686   : > { %3512 = vmatprep.subr.mxu1 %v4041_v58 }
 0x687   : > { %3513 = vmatpush3.msra.mxu1 %v1123_v33  ;;  %v1266_v33 = vstv %s1265_s29 }
 0x688   : > { %3514 = vmatprep.subr.mxu1 %v4041_v58  ;;  %vm1267_vm10 = vcmp.eq.s32.totalorder %v1266_v33, 1 }
 0x689   : > { %3515 = vmatpush3.msra.mxu1 %v1122_v35 }
 0x68a   : > { %3516 = vmatprep.subr.mxu1 %v4041_v58 }
 0x6fe   : > { %v774_v51 = vpop.xlane.xlu0 %773 }
 0x6ff   : > { %v775_v52 = vsub.f32 %v771_v46, %v774_v51  ;;  %v3189_v46 = vld [vmem:[%s4979_s7 + $0x4] ss:$0 sm:$0xff] }
 0x701   : > { %v776_v53 = vmul.f32 1.442695, %v775_v52 }
 0x703   : > { %3831 = vpow2.f32 %v776_v53  ;;  %v1121_v53 = vld [vmem:[%s4978_s6 + $0x10] sm:$0xff] }
 0x704   : > { %3517 = vmatpush3.msra.mxu1 %v1121_v53 }
 0x705   : > { %3518 = vmatprep.subr.mxu1 %v4041_v58 }
 0x710   : > { %v3832_v54 = vpop.eup %3831 }
 0x711   : > { %3463 = vmatmul.mubr.msk.f32.vlgmr.msra.gmra.mxu0 %vm604_vm9, %v3832_v54  ;;  %v778_v55 = vsel %vm604_vm9, %v3832_v54, 0.0  ;;  %v1120_v54 = vld [vmem:[%s4978_s6 + $0x8] sm:$0xff] }
 0x712   : > { %779 = vadd.xlane.f32.xlu0 %v778_v55  ;;  %3469 = vmatprep.mubr.msk.f32.mxu0 %vm4042_vm8, %v4041_v58  ;;  %v1119_v55 = vld [vmem:[%s4978_s6] sm:$0xff] }
 0x713   : > { %3466 = vmatpush3.msra.mxu0 %v523_v59  ;;  %3519 = vmatpush3.msra.mxu1 %v1120_v54 }
 0x714   : > { %3467 = vmatprep.subr.mxu0 %v4041_v58  ;;  %3520 = vmatprep.subr.mxu1 %v4041_v58 }
 0x715   : > { %3468 = vmatpush3.msra.mxu0 %v522_v60  ;;  %3521 = vmatpush3.msra.mxu1 %v1119_v55 }
 0x716   : > { %3479 = vmatprep.subr.mxu0 %v4041_v58 }
 0x730   : > { %v1001_v56 = vpop.f32.mrf.mxu1 }
 0x732   : > { %v3478_v57 = vpop.f32.mrf.mxu1 }
 0x79b   : > { %v780_v61 = vpop.xlane.xlu0 %779 }
 0x79c   : > { %3833 = vrcp.f32 %v780_v61 }
 0x7a9   : > { %v3834_v62 = vpop.eup %3833 }
 0x7d1   : > { %v853_v63 = vpop.f32.mrf.mxu0 }
 0x7d2   : > { %v858_v0 = vmul.f32 %v3834_v62, %v853_v63  ;;  %v3193_v62 = vld [vmem:[%s4979_s7 + $0x7] ss:$0 sm:$0xff] }
 0x7d3   : > { %v3464_v1 = vpop.f32.mrf.mxu0 }
 0x7d4   : > { %3470 = vmatmul.mubr.msk.f32.vlgmr.msra.gmra.mxu0 %vm44_vm1, %v858_v0 }
 0x7d5   : > { %3487 = vmatprep.mubr.msk.f32.mxu0 %vm4042_vm8, %v4041_v58  ;;  %3480 = vmatpush3.msra.mxu0 %v1039_v17 }
 0x7d6   : > { %3481 = vmatprep.subr.mxu0 %v4041_v58 }
 0x7d7   : > { %3482 = vmatpush3.msra.mxu0 %v1038_v18 }
 0x7d8   : > { %3483 = vmatprep.subr.mxu0 %v4041_v58 }
 0x7d9   : > { %3484 = vmatpush3.msra.mxu0 %v1037_v19  ;;  %v3195_v19 = vld [vmem:[%s4979_s7 + $0xb] ss:$0 sm:$0xff] }
 0x7da   : > { %3485 = vmatprep.subr.mxu0 %v4041_v58 }
 0x7db   : > { %3486 = vmatpush3.msra.mxu0 %v1036_v20 }
 0x7dc   :  { %3525 = vmatprep.subr.mxu0 (%p373_p1), %v4038_v7 }
 0x894   : > { %v928_v3 = vpop.f32.mrf.mxu0 }
 0x895   : > { %v1002_v4 = vadd.f32 %v1001_v56, %v928_v3  ;;  %v3191_v56 = vld [vmem:[%s4979_s7 + $0x6] ss:$0 sm:$0xff] }
 0x896   : > { %v3471_v5 = vpop.f32.mrf.mxu0 }
 0x897   : > { %v1009_v6 = vadd.f32 %v3188_v2, %v1002_v4 }
 0x899   : > { %v4345_v8 = vadd.f32 %v1009_v6, %v4246_v50 }
 0x89b   : > { %v1013_v9 = vsel %vm404_vm7, %v4345_v8, 0.0 }
 0x89c   : > { %1014 = vadd.xlane.f32.xlu0 %v1013_v9 }
 0x925   : > { %v1015_v12 = vpop.xlane.xlu0 %1014 }
 0x926   : > { %v1016_v13 = vmul.f32 0.03125, %v1015_v12 }
 0x928   : > { %v1017_v14 = vsub.f32 %v4345_v8, %v1016_v13 }
 0x92a   : > { %v1018_v15 = vmul.f32 %v1017_v14, %v1017_v14 }
 0x92c   : > { %v1019_v16 = vsel %vm404_vm7, %v1018_v15, 0.0 }
 0x92d   : > { %1020 = vadd.xlane.f32.xlu0 %v1019_v16 }
 0x9b6   : > { %v1021_v37 = vpop.xlane.xlu0 %1020 }
 0x9b7   : > { %v1022_v43 = vmul.f32 0.03125, %v1021_v37 }
 0x9b9   : > { %v1023_v44 = vadd.f32 1e-05, %v1022_v43 }
 0x9bb   : > { %3835 = vrsqrt.f32 %v1023_v44 }
 0x9c8   : > { %v3836_v45 = vpop.eup %3835 }
 0x9c9   : > { %v1025_v47 = vmul.f32 %v3836_v45, %v1017_v14 }
 0x9cb   : > { %v1030_v51 = vmul.f32 %v3189_v46, %v1025_v47 }
 0x9cd   : > { %v1035_v52 = vadd.f32 %v3190_v49, %v1030_v51 }
 0x9cf   : > { %3488 = vmatmul.mubr.msk.f32.vlgmr.msra.gmra.mxu0 %vm404_vm7, %v1035_v52 }
 0x9d0   :  { %3533 = vmatprep.mubr.msk.f32.mxu0 (%p373_p1), %vm4039_vm0, %v4038_v7 }
 0xa8f   : > { %v1114_v57 = vpop.f32.mrf.mxu0 }
 0xa90   : > { %v1115_v59 = vadd.f32 %v3191_v56, %v1114_v57 }
 0xa91   : > { %v3489_v60 = vpop.f32.mrf.mxu0 }
 0xa92   : > { %v1118_v61 = vmax.f32 %v1115_v59, 0.0 }
 0xa94   : > { %3523 = vmatmul.mubr.f32.vlgmr.msra.gmra.mxu1 %v1118_v61 }
 0xb54   : > { %v1206_v63 = vpop.f32.mrf.mxu1 }
 0xb55   : > { %v1207_v0 = vadd.f32 %v3193_v62, %v1206_v63 }
 0xb56   : > { %v3524_v1 = vpop.f32.mrf.mxu1 }
 0xb57   : > { %v1210_v2 = vadd.f32 %v1207_v0, %v4345_v8 }
 0xb59   : > { %v1211_v3 = vsub.f32 %v1210_v2, %v4246_v50 }
 0xb5b   : > { %v1212_v4 = vmul.f32 %v1211_v3, %v4243_v48 }
 0xb5d   : > { %v4446_v29 = vadd.f32 %v1212_v4, %v4246_v50   ;;  %v3194_v50 = vld [vmem:[%s4979_s7 + $0xa] ss:$0 sm:$0xff] }
 0xb5f   : > { %v1218_v5 = vsel %vm404_vm7, %v4446_v29, 0.0 }
 0xb60   : > { %1219 = vadd.xlane.f32.xlu0 %v1218_v5 }
 0xbe9   : > { %v1220_v6 = vpop.xlane.xlu0 %1219 }
 0xbea   : > { %v1221_v9 = vmul.f32 0.03125, %v1220_v6 }
 0xbec   : > { %v1222_v12 = vsub.f32 %v4446_v29, %v1221_v9 }
 0xbee   : > { %v1223_v13 = vmul.f32 %v1222_v12, %v1222_v12 }
 0xbf0   : > { %v1224_v14 = vsel %vm404_vm7, %v1223_v13, 0.0  ;;  %v3200_v13 = vld [vmem:[%s4979_s7 + $0x8] ss:$0 sm:$0xff] (%p373_p1) }
 0xbf1   : > { %1225 = vadd.xlane.f32.xlu0 %v1224_v14 }
 0xc7a   : > { %v1226_v8 = vpop.xlane.xlu0 %1225 }
 0xc7b   : > { %v1227_v15 = vmul.f32 0.03125, %v1226_v8  ;;  %v3201_v8 = vld [vmem:[%s4979_s7 + $0x9] ss:$0 sm:$0xff] (%p373_p1) }
 0xc7d   : > { %v1228_v16 = vadd.f32 1e-05, %v1227_v15 }
 0xc7f   : > { %3837 = vrsqrt.f32 %v1228_v16 }
 0xc8c   : > { %v3838_v17 = vpop.eup %3837 }
 0xc8d   : > { %v1230_v18 = vmul.f32 %v3838_v17, %v1222_v12  ;;  %v1404_v17 = vshrl.u32 (%p373_p1), %v34_v10, 7  ;;  %v4544_v10 = vmov (%p373_p1), 0.0  }
 0xc8f   : > { %v1235_v20 = vmul.f32 %v3194_v50, %v1230_v18  ;;  %vm1405_vm12 = vcmp.le.s32.totalorder (%p373_p1), %v4144_v11, %v1404_v17  ;;  %v4048_v50 = vmov (%p373_p1), -1e+09   ;;  %v4546_v11 = vmov (%p373_p1), 0.0  }
 0xc90   :  { %v4531_v18 = vsel (%p373_p1), %vm1405_vm12, 0.0, %v4048_v50 }
 0xc91   : > { %v1240_v22 = vadd.f32 %v3195_v19, %v1235_v20  ;;  %v3202_v19 = vld [vmem:[%s4979_s7 + $0x15] ss:$0 sm:$0xff] (%p373_p1) }
 0xc93   : > { %v1245_v23 = vmul.f32 %v3196_v21, %v1240_v22 }
 0xc95   : > { %v1246_v24 = vsel %vm404_vm7, %v1245_v23, 0.0  ;;  %v4538_v23 = vmov (%p373_p1), 0.0  }
 0xc96   : > { %1247 = vadd.xlane.f32.xlu0 %v1246_v24  ;;  %v4540_v24 = vmov (%p373_p1), 1.0  }
 0xd1f   : > { %v1248_v26 = vpop.xlane.xlu0 %1247 }
 0xd20   : > { %v1253_v27 = vadd.f32 %v3197_v25, %v1248_v26  ;;  %v4542_v25 = vmov (%p373_p1), 1.0  }
 0xd22   : > { %v3198_v28 = vmul.f32 -1.442695, %v1253_v27 }
 0xd24   : > { %3839 = vpow2.f32 %v3198_v28 }
 0xd31   : > { %v3840_v30 = vpop.eup %3839 }
 0xd32   : > { %v1257_v31 = vadd.f32 1.0, %v3840_v30 }
 0xd34   : > { %3841 = vrcp.f32 %v1257_v31 }
 0xd41   : > { %v3842_v35 = vpop.eup %3841 }
 0xd42   : > { %v1260_v37 = vadd.f32 %v3995_v41, %v3842_v35 }
 0xd44   : > { %vm1261_vm11 = vcmp.lt.f32.partialorder %v1260_v37, 0.99  ;;  %v1269_v43 = vsub.f32 1.0, %v1260_v37  ;;  %v1284_v44 = vsub.f32 %v1260_v37, %v3995_v41 }
 0xd45   : > { %v3199_v45 = vsel %vm1261_vm11, 1.0, %v4041_v58 }
 0xd46   : > { %v1268_v46 = vsel %vm1267_vm10, 0.0, %v3199_v45  ;;  %v1270_v47 = vsub.f32 %v1269_v43, %v3991_v40  ;;  %v1285_v49 = vmul.f32 %v3987_v39, %v1284_v44 }
 0xd47   : > { %v1293_v51 = vmul.f32 %v3987_v39, %v1268_v46   ;;  %v1273_v54 = vsub.f32 1.0, %v1268_v46  ;;  %v1275_v56 = vmul.f32 %v3842_v35, %v1268_v46 }
 0xd48   : > { %v1271_v52 = vmul.f32 %v1270_v47, %v1268_v46  ;;  %v1286_v41 = vadd.f32 %v3995_v41, %v1285_v49  }
 0xd4a   : > { %v1272_v53 = vadd.f32 %v3991_v40, %v1271_v52 }
 0xd4c   : > { %v1274_v55 = vmul.f32 %v1273_v54, %v1272_v53  ;;  %v1287_v57 = vsub.f32 %v1272_v53, %v3991_v40 }
 0xd4e   : > { %v1276_v59 = vadd.f32 %v1275_v56, %v1274_v55  ;;  %v1288_v58 = vmul.f32 %v3987_v39, %v1287_v57  ;;  %v4983_v39 = vmov %v1293_v51 }
 0xd4f   :  { %v1321_v39 = vld [vmem:[%s4977_s5 + $0x30] sm:$0xff] (%p373_p1) }
 0xd50   : > { %v4477_v40 = vadd.f32 %v3991_v40, %v1288_v58   ;;  %1279 = vperm.xlu1 %3824, %v1276_v59  }
 0xd52   : > { %v4982_v60 = vmov %v4477_v40 }
 0xd53   : > { %v4984_v40 = vmov %v4982_v60 }
 0xdcb   : > { %v1280_v61 = vpop.permute.xlu1 %1279 }
 0xdcc   : > { %v1282_v62 = vmul.f32 %v1280_v61, %v4446_v29  ;;  %v1324_v29 = vld [vmem:[%s4977_s5 + $0x120] sm:$0xff] (%p373_p1) }
 0xdcd   :  { %3526 = vmatpush3.msra.mxu0 (%p373_p1), %v1324_v29 }
 0xdce   : > { %v1283_v63 = vadd.f32 %v3999_v42, %v1282_v62  ;;  %3527 = vmatprep.subr.mxu0 (%p373_p1), %v4038_v7 }
 0xdcf   :  { %3528 = vmatpush3.msra.mxu0 (%p373_p1), %v1323_v34 }
 0xdd0   : > { %v1290_v0 = vsub.f32 %v1283_v63, %v3999_v42  ;;  %3529 = vmatprep.subr.mxu0 (%p373_p1), %v4038_v7 }
 0xdd1   :  { %3530 = vmatpush3.msra.mxu0 (%p373_p1), %v1322_v38 }
 0xdd2   : > { %v1291_v1 = vmul.f32 %v1290_v0, %v4243_v48  ;;  %375 = sbr.rel (!%p373_p1) target bundleno = 344 (0x158), region = 76  ;;  %3531 = vmatprep.subr.mxu0 (%p373_p1), %v4038_v7 }
 0xdd3   :  { %3532 = vmatpush3.msra.mxu0 (%p373_p1), %v1321_v39 }
 0xdd4   : > { %v1292_v2 = vadd.f32 %v3999_v42, %v1291_v1  }
 0xdd6   : > { %v4985_v42 = vmov %v1292_v2  ;;  %v1297_v48 = vsel (%p373_p1), %vm404_vm7, %v1292_v2, 0.0 }
 0xdd7   :  { %1298 = vadd.xlane.f32.xlu0 %v1297_v48 }
 0xe60   :  { %v1299_v3 = vpop.xlane.xlu0 %1298 }
 0xe61   :  { %v1301_v4 = vmul.f32 0.03125, %v1299_v3 }
 0xe63   :  { %v1302_v5 = vsub.f32 %v1292_v2, %v1301_v4 }
 0xe65   :  { %v1303_v6 = vmul.f32 %v1302_v5, %v1302_v5 }
 0xe67   :  { %v1304_v9 = vsel %vm404_vm7, %v1303_v6, 0.0 }
 0xe68   :  { %1305 = vadd.xlane.f32.xlu0 %v1304_v9 }
 0xef1   :  { %v1306_v40 = vpop.xlane.xlu0 %1305 }
 0xef2   :  { %v1307_v41 = vmul.f32 0.03125, %v1306_v40 }
 0xef4   :  { %v1308_v42 = vadd.f32 1e-05, %v1307_v41 }
 0xef6   :  { %3843 = vrsqrt.f32 %v1308_v42 }
 0xf03   :  { %v3844_v12 = vpop.eup %3843 }
 0xf04   :  { %v1310_v14 = vmul.f32 %v3844_v12, %v1302_v5 }
 0xf06   :  { %v1315_v15 = vmul.f32 %v3200_v13, %v1310_v14 }
 0xf08   :  { %v1320_v16 = vadd.f32 %v3201_v8, %v1315_v15 }
 0xf0a   :  { %3534 = vmatmul.mubr.msk.f32.vlgmr.msra.gmra.mxu0 %vm404_vm7, %v1320_v16 }
 0xfca   :  { %v1399_v20 = vpop.f32.mrf.mxu0 }
 0xfcb   :  { %v4536_v21 = vadd.f32 %v3202_v19, %v1399_v20 }
 0xfcc   :  { %v3535_v22 = vpop.f32.mrf.mxu0 }
 0xfcd LB: > { %v4049_v26 = vmov 0   ;;  %s3106_s22 = scalar_lea.vmem %s4976_s4, %s4035_s2  ;;  %v1424_v27 = vadd.f32 %v4031_v32, %v4202_v36  ;;  %v1466_v51 = vld [vmem:[%s4977_s5 + $0x108] sm:$0xff]  ;;  %v4050_v52 = vmov 0.0   ;;  %vm4051_vm13 = vmmov 0   ;;  %v1463_v54 = vld [vmem:[%s4977_s5 + $0x18] sm:$0xff]  ;;  %s4052_s15 = smov 64   ;;  %s4035_s2 = sphi %s4551_s2, %s1412_s2   ;;  %v4031_v32 = vphi %v4198_v32, %v4879_v32   ;;  %v4027_v11 = vphi %v4546_v11, %v4988_v11   ;;  %v4023_v10 = vphi %v4544_v10, %v2919_v10   ;;  %v4019_v25 = vphi %v4542_v25, %v4987_v25   ;;  %v4015_v24 = vphi %v4540_v24, %v4986_v24   ;;  %v4011_v23 = vphi %v4538_v23, %v4624_v23  }
 0xfce   : > { %3845 = vset.pattern.permute.xlu0 %v4049_v26  ;;  %3846 = vset.pattern.permute.xlu1 %v4049_v26  ;;  %v3205_v28 = vld [vmem:[%s3106_s22 + $0x60] ss:$0 sm:$0xff]  ;;  %v1464_v53 = vld [vmem:[%s4977_s5 + $0x68] sm:$0xff]  ;;  %v3208_v1 = vld [vmem:[%s4979_s7 + $0x10] ss:$0 sm:$0xff]  ;;  %s4053_s17 = smov 96  }
 0xfcf   : > { %1433 = vperm.xlu0 %3845, %v4015_v24   ;;  %v1429_v30 = vadd.f32 %v3205_v28, %v1424_v27  ;;  %3536 = vmatprep.subr.mxu0 %v4050_v52  ;;  %v3206_v58 = vld [vmem:[%s4979_s7 + $0xe] ss:$0 sm:$0xff]  ;;  %v3207_v62 = vld [vmem:[%s4979_s7 + $0xf] ss:$0 sm:$0xff]  ;;  %s4054_s0 = smov 80   ;;  %s4055_s18 = smov 112  }
 0xfd0   : > { %3544 = vmatprep.mubr.msk.f32.mxu0 %vm4051_vm13, %v4050_v52  ;;  %3537 = vmatpush3.msra.mxu0 %v1466_v51  ;;  %s4056_s1 = smov 48   ;;  %v1555_v17 = vld [vmem:[%s4977_s5 + $0x70] sm:$0xff]  ;;  %v1554_v50 = vld [vmem:[%s4977_s5 + $0x20] sm:$0xff]  ;;  %p2897_p2 = scmp.eq.s32.totalorder %s4035_s2, 7 }
 0xfd1   : > { %v1430_v31 = vsub.f32 %v1429_v30, %v4031_v32  ;;  %3574 = vmatprep.subr.mxu1 %v4050_v52  ;;  %3538 = vmatprep.subr.mxu0 %v4050_v52  ;;  %s1412_s2 = sadd.s32 1, %s4035_s2  }
 0xfd2   : > { %3578 = vmatprep.mubr.msk.f32.mxu1 %vm4051_vm13, %v4050_v52  ;;  %3575 = vmatpush3.msra.mxu1 %v1555_v17  ;;  %s2898_s14 = scalar_select %p2897_p2, 1, 0 }
 0xfd3   : > { %3576 = vmatprep.subr.mxu1 %v4050_v52  ;;  %p1409_p3 = scmp.ge.s32.totalorder %s1412_s2, 8  }
 0xfd4   : > { %3577 = vmatpush3.msra.mxu1 %v1554_v50  ;;  %v2954_v36 = vld [vmem:[%s4977_s5 + $0xe8] sm:$0xff] (%p1409_p3)  ;;  %s4057_s24 = smov (%p1409_p3), [#allocation4]   ;;  %vm3074_vm2 = vcmask (%p1409_p3), 0  }
 0xfd5   : > { %3592 = vmatprep.subr.mxu1 %v4050_v52  ;;  %s3092_s25 = sshll.u32 (%p1409_p3), %s4057_s24, 4  ;;  %s3093_s25 = int_to_ptr.vmem [resolvable:$true] %s3092_s25 }
 0xfd6   :  { %s3881_s26 = scalar_lea.vmem (%p1409_p3), %s3093_s25, 16  ;;  %s3885_s27 = scalar_lea.vmem (%p1409_p3), %s3093_s25, 32 }
 0xfd7   :  { %p3882_p4 = scmp.ne.s32.totalorder (%p1409_p3), %s3093_s25, %s3881_s26  ;;  %p3886_p5 = scmp.lt.s32.totalorder (%p1409_p3), %s3093_s25, %s3093_s25 }
 0xfd8   :  { %p3887_p6 = scmp.lt.s32.totalorder (%p1409_p3), %s3885_s27, %s3881_s26 }
 0xfda   :  { %p3888_p7 = por (%p1409_p3), %p3887_p6, %p3886_p5 }
 0xfdc   :  { %p3889_p8 = pnand (%p1409_p3), %p3888_p7, %p3882_p4 }
0x104a   : > { %v4578_v33 = vpop.permute.xlu0 %1433 }
0x104b   : > { %v1436_v35 = vmul.f32 %v4578_v33, %v1430_v31 }
0x104d   : > { %v4581_v37 = vadd.f32 %v4031_v32, %v1436_v35  ;;  %v1465_v32 = vld [vmem:[%s4977_s5 + $0xb8] sm:$0xff] }
0x104e   : > { %3539 = vmatpush3.msra.mxu0 %v1465_v32 }
0x104f   : > { %v1440_v43 = vsel %vm404_vm7, %v4581_v37, 0.0  ;;  %3540 = vmatprep.subr.mxu0 %v4050_v52 }
0x1050   : > { %1441 = vadd.xlane.f32.xlu0 %v1440_v43  ;;  %3541 = vmatpush3.msra.mxu0 %v1464_v53  ;;  %v1557_v53 = vld [vmem:[%s4977_s5 + $0x110] sm:$0xff] }
0x1051   : > { %3542 = vmatprep.subr.mxu0 %v4050_v52 }
0x1052   : > { %3543 = vmatpush3.msra.mxu0 %v1463_v54  ;;  %v1556_v54 = vld [vmem:[%s4977_s5 + $0xc0] sm:$0xff] }
0x1053   : > { %3547 = vmatprep.subr.mxu0 %v4050_v52 }
0x10d9   : > { %v1442_v44 = vpop.xlane.xlu0 %1441 }
0x10da   : > { %v1443_v45 = vmul.f32 0.03125, %v1442_v44 }
0x10dc   : > { %v1444_v46 = vsub.f32 %v4581_v37, %v1443_v45 }
0x10de   : > { %v1445_v47 = vmul.f32 %v1444_v46, %v1444_v46 }
0x10e0   : > { %v1446_v49 = vsel %vm404_vm7, %v1445_v47, 0.0 }
0x10e1   : > { %1447 = vadd.xlane.f32.xlu1 %v1446_v49 }
0x116a   : > { %v1448_v55 = vpop.xlane.xlu1 %1447 }
0x116b   : > { %v1449_v56 = vmul.f32 0.03125, %v1448_v55 }
0x116d   : > { %v1450_v57 = vadd.f32 1e-05, %v1449_v56 }
0x116f   : > { %3847 = vrsqrt.f32 %v1450_v57 }
0x117c   : > { %v3848_v59 = vpop.eup %3847 }
0x117d   : > { %v1452_v61 = vmul.f32 %v3848_v59, %v1444_v46 }
0x117f   : > { %v1457_v63 = vmul.f32 %v3206_v58, %v1452_v61  ;;  %v3218_v61 = vld [vmem:[%s4979_s7 + $0x11] ss:$0 sm:$0xff] }
0x1181   : > { %v1462_v0 = vadd.f32 %v3207_v62, %v1457_v63 }
0x1183   : > { %3545 = vmatmul.mubr.msk.f32.vlgmr.msra.gmra.mxu0 %vm404_vm7, %v1462_v0 }
0x1184   : > { %3549 = vmatprep.mubr.msk.f32.mxu0 %vm4051_vm13, %v4050_v52 }
0x1243   : > { %v1541_v2 = vpop.f32.mrf.mxu0 }
0x1244   : > { %v1542_v48 = vadd.f32 %v3208_v1, %v1541_v2 }
0x1245   : > { %v3546_v3 = vpop.f32.mrf.mxu0 }
0x1246   : > { %v1545_v4 = vsub.f32 %v1542_v48, %v4011_v23 }
0x1248   : > { %v1546_v5 = vmul.f32 %v1545_v4, %v4578_v33 }
0x124a   : > { %v4624_v23 = vadd.f32 %v4011_v23, %v1546_v5  }
0x124c   : > { %1650 = vrot.lane.b32.xlu0 %v4624_v23, %s4052_s15  ;;  %1560 = vrot.lane.b32.xlu1 %v4624_v23, %s4053_s17 }
0x1250   : > { %1730 = vrot.lane.b32.xlu0 %v4624_v23, %s4054_s0 }
0x12be   : > { %v1561_v6 = vpop.permute.xlu1 %1560  ;;  %v1651_v9 = vpop.permute.xlu0 %1650 }
0x12bf   : > { %3548 = vmatpush3.xpose.msk.msra.mxu0 %vm44_vm1, %v1561_v6 }
0x12c0   : > { %3552 = vmatprep.subr.mxu0 %v4050_v52 }
0x12c2   : > { %3550 = vmatmul.mubr.msk.f32.vlgmr.msra.gmra.mxu0 %vm44_vm1, %v4624_v23  ;;  %v1731_v8 = vpop.permute.xlu0 %1730 }
0x12c3   : > { %3553 = vmatpush3.msra.mxu0 %v1651_v9  ;;  %3554 = vmatprep.mubr.msk.f32.mxu0 %vm4051_vm13, %v4050_v52 }
0x12c4   : > { %3557 = vmatprep.subr.mxu0 %v4050_v52 }
0x1382   : > { %v1633_v29 = vpop.f32.mrf.mxu0 }
0x1383   : > { %v1637_v34 = vmul.f32 0.25, %v1633_v29 }
0x1384   : > { %v3551_v38 = vpop.f32.mrf.mxu0 }
0x1385   : > { %v1638_v39 = vadd.f32 %v1637_v34, %v4531_v18 }
0x1387   : > { %v1640_v40 = vsel %vm604_vm9, %v1638_v39, -inf }
0x1388   : > { %1641 = vmax.xlane.f32.xlu1 %v1640_v40  ;;  %v2076_v40 = vld [vmem:[%s4977_s5 + $0x78] sm:$0xff] }
0x1399   : > { %1728 = vrot.lane.b32.xlu1 %v4624_v23, %s4055_s18 }
0x139d   : > { %1817 = vrot.lane.b32.xlu1 %v4624_v23, %s4056_s1 }
0x1411   : > { %v1642_v41 = vpop.xlane.xlu1 %1641 }
0x1412   : > { %v1643_v42 = vsub.f32 %v1638_v39, %v1642_v41  ;;  %v2078_v39 = vld [vmem:[%s4977_s5 + $0x118] sm:$0xff]  ;;  %v2075_v41 = vld [vmem:[%s4977_s5 + $0x28] sm:$0xff] }
0x1414   : > { %v1644_v12 = vmul.f32 1.442695, %v1643_v42 }
0x1415   : > { %v1729_v13 = vpop.permute.xlu1 %1728 }
0x1416   : > { %3849 = vpow2.f32 %v1644_v12 }
0x1419   : > { %v1818_v16 = vpop.permute.xlu1 %1817 }
0x1423   : > { %v3850_v14 = vpop.eup %3849 }
0x1424   : > { %3555 = vmatmul.mubr.msk.f32.vlgmr.msra.gmra.mxu0 %vm604_vm9, %v3850_v14  ;;  %v1646_v15 = vsel %vm604_vm9, %v3850_v14, 0.0 }
0x1425   : > { %3558 = vmatpush3.xpose.msk.msra.mxu0 %vm44_vm1, %v1731_v8  ;;  %1647 = vadd.xlane.f32.xlu1 %v1646_v15  ;;  %v3219_v8 = vld [vmem:[%s4979_s7 + $0x12] ss:$0 sm:$0xff] }
0x1426   : > { %3559 = vmatprep.mubr.msk.f32.mxu0 %vm4051_vm13, %v4050_v52  ;;  %3562 = vmatprep.subr.mxu0 %v4050_v52 }
0x1428   : > { %3560 = vmatmul.mubr.msk.f32.vlgmr.msra.gmra.mxu0 %vm44_vm1, %v1729_v13 }
0x1429   : > { %3563 = vmatpush3.msra.mxu0 %v1818_v16  ;;  %3564 = vmatprep.mubr.msk.f32.mxu0 %vm4051_vm13, %v4050_v52  ;;  %v3220_v16 = vld [vmem:[%s4979_s7 + $0x13] ss:$0 sm:$0xff] }
0x142a   : > { %3567 = vmatprep.subr.mxu0 %v4050_v52 }
0x14ae   : > { %v1648_v19 = vpop.xlane.xlu1 %1647 }
0x14af   : > { %3851 = vrcp.f32 %v1648_v19 }
0x14bc   : > { %v3852_v20 = vpop.eup %3851 }
0x14e4   : > { %v1722_v22 = vpop.f32.mrf.mxu0 }
0x14e5   : > { %v1727_v26 = vmul.f32 %v3852_v20, %v1722_v22  ;;  %v3221_v20 = vld [vmem:[%s4979_s7 + $0x14] ss:$0 sm:$0xff] }
0x14e6   : > { %v3556_v27 = vpop.f32.mrf.mxu0 }
0x14e7   : > { %3579 = vmatmul.mubr.msk.f32.vlgmr.msra.gmra.mxu1 %vm44_vm1, %v1727_v26 }
0x14e8   : > { %v1802_v28 = vpop.f32.mrf.mxu0  ;;  %3593 = vmatpush3.xpose.msk.msra.mxu1 %vm44_vm1, %v4536_v21  ;;  %3594 = vmatprep.mubr.msk.f32.mxu1 %vm4051_vm13, %v4050_v52 }
0x14e9   : > { %v1806_v30 = vmul.f32 0.25, %v1802_v28  ;;  %3597 = vmatprep.subr.mxu1 %v4050_v52 }
0x14ea   : > { %v3561_v31 = vpop.f32.mrf.mxu0 }
0x14eb   : > { %v1807_v35 = vadd.f32 %v1806_v30, %v4531_v18  ;;  %v2953_v18 = vld [vmem:[%s4977_s5 + $0x98] sm:$0xff] (%p1409_p3) }
0x14ed   : > { %v1808_v43 = vsel %vm604_vm9, %v1807_v35, -inf }
0x14ee   : > { %1809 = vmax.xlane.f32.xlu0 %v1808_v43 }
0x1577   : > { %v1810_v44 = vpop.xlane.xlu0 %1809 }
0x1578   : > { %v1811_v45 = vsub.f32 %v1807_v35, %v1810_v44 }
0x157a   : > { %v1812_v46 = vmul.f32 1.442695, %v1811_v45 }
0x157c   : > { %3853 = vpow2.f32 %v1812_v46 }
0x1589   : > { %v3854_v47 = vpop.eup %3853 }
0x158a   : > { %3565 = vmatmul.mubr.msk.f32.vlgmr.msra.gmra.mxu0 %vm604_vm9, %v3854_v47  ;;  %v1814_v49 = vsel %vm604_vm9, %v3854_v47, 0.0 }
0x158b   : > { %1815 = vadd.xlane.f32.xlu0 %v1814_v49  ;;  %3571 = vmatprep.mubr.msk.f32.mxu0 %vm4051_vm13, %v4050_v52 }
0x158c   : > { %3568 = vmatpush3.msra.mxu0 %v1557_v53 }
0x158d   : > { %3569 = vmatprep.subr.mxu0 %v4050_v52 }
0x158e   : > { %3570 = vmatpush3.msra.mxu0 %v1556_v54 }
0x158f   : > { %3581 = vmatprep.subr.mxu0 %v4050_v52 }
0x15a7   : > { %v2037_v51 = vpop.f32.mrf.mxu1 }
0x15a9   : > { %v3580_v32 = vpop.f32.mrf.mxu1 }
0x1614   : > { %v1816_v55 = vpop.xlane.xlu0 %1815 }
0x1615   : > { %3855 = vrcp.f32 %v1816_v55 }
0x1622   : > { %v3856_v56 = vpop.eup %3855 }
0x164a   : > { %v1889_v57 = vpop.f32.mrf.mxu0 }
0x164b   : > { %v1894_v59 = vmul.f32 %v3856_v56, %v1889_v57 }
0x164c   : > { %v3566_v58 = vpop.f32.mrf.mxu0 }
0x164d   : > { %3572 = vmatmul.mubr.msk.f32.vlgmr.msra.gmra.mxu0 %vm44_vm1, %v1894_v59 }
0x164e   : > { %3589 = vmatprep.mubr.msk.f32.mxu0 %vm4051_vm13, %v4050_v52  ;;  %3582 = vmatpush3.msra.mxu0 %v2078_v39 }
0x164f   : > { %3583 = vmatprep.subr.mxu0 %v4050_v52 }
0x170d   : > { %v1964_v62 = vpop.f32.mrf.mxu0 }
0x170e   : > { %v2038_v63 = vadd.f32 %v2037_v51, %v1964_v62 }
0x170f   : > { %v3573_v0 = vpop.f32.mrf.mxu0 }
0x1710   : > { %v2045_v1 = vadd.f32 %v3218_v61, %v2038_v63  ;;  %v2158_v61 = vld [vmem:[%s4977_s5 + $0x88] sm:$0xff]  ;;  %v2157_v0 = vld [vmem:[%s4977_s5 + $0x38] sm:$0xff] }
0x1712   : > { %v2046_v2 = vadd.f32 %v2045_v1, %v4581_v37 }
0x1714   : > { %v2047_v48 = vsub.f32 %v2046_v2, %v4581_v37  ;;  %v2160_v2 = vld [vmem:[%s4977_s5 + $0x128] sm:$0xff] }
0x1716   : > { %v2048_v3 = vmul.f32 %v2047_v48, %v4578_v33  ;;  %v2159_v48 = vld [vmem:[%s4977_s5 + $0xd8] sm:$0xff] }
0x1718   : > { %v4691_v4 = vadd.f32 %v2048_v3, %v4581_v37  ;;  %v2077_v37 = vld [vmem:[%s4977_s5 + $0xc8] sm:$0xff] }
0x1719   : > { %3584 = vmatpush3.msra.mxu0 %v2077_v37 }
0x171a   : > { %v2052_v5 = vsel %vm404_vm7, %v4691_v4, 0.0  ;;  %3585 = vmatprep.subr.mxu0 %v4050_v52 }
0x171b   : > { %2053 = vadd.xlane.f32.xlu0 %v2052_v5  ;;  %3586 = vmatpush3.msra.mxu0 %v2076_v40 }
0x171c   : > { %3587 = vmatprep.subr.mxu0 %v4050_v52 }
0x171d   : > { %3588 = vmatpush3.msra.mxu0 %v2075_v41 }
0x171e   : > { %3602 = vmatprep.subr.mxu0 %v4050_v52 }
0x17a4   : > { %v2054_v6 = vpop.xlane.xlu0 %2053 }
0x17a5   : > { %v2055_v9 = vmul.f32 0.03125, %v2054_v6 }
0x17a7   : > { %v2056_v29 = vsub.f32 %v4691_v4, %v2055_v9 }
0x17a9   : > { %v2057_v34 = vmul.f32 %v2056_v29, %v2056_v29 }
0x17ab   : > { %v2058_v38 = vsel %vm404_vm7, %v2057_v34, 0.0 }
0x17ac   : > { %2059 = vadd.xlane.f32.xlu0 %v2058_v38 }
0x17c2   : > { %2328 = vrot.lane.b32.xlu0 %v4536_v21, %s4055_s18 }
0x1835   : > { %v2060_v42 = vpop.xlane.xlu0 %2059 }
0x1836   : > { %v2061_v12 = vmul.f32 0.03125, %v2060_v42  ;;  %v3231_v42 = vld [vmem:[%s4979_s7 + $0x16] ss:$0 sm:$0xff] }
0x1838   : > { %v2062_v13 = vadd.f32 1e-05, %v2061_v12 }
0x1839   : > { %v2329_v19 = vpop.permute.xlu0 %2328 }
0x183a   : > { %3857 = vrsqrt.f32 %v2062_v13 }
0x1847   : > { %v3858_v14 = vpop.eup %3857 }
0x1848   : > { %v2064_v15 = vmul.f32 %v3858_v14, %v2056_v29 }
0x184a   : > { %v2069_v17 = vmul.f32 %v3219_v8, %v2064_v15 }
0x184c   : > { %v2074_v50 = vadd.f32 %v3220_v16, %v2069_v17 }
0x184e   : > { %3590 = vmatmul.mubr.msk.f32.vlgmr.msra.gmra.mxu0 %vm404_vm7, %v2074_v50 }
0x184f   : > { %3604 = vmatprep.mubr.msk.f32.mxu0 %vm4051_vm13, %v4050_v52  ;;  %3603 = vmatpush3.xpose.msk.msra.mxu0 %vm44_vm1, %v2329_v19 }
0x1850   : > { %3612 = vmatprep.subr.mxu0 %v4050_v52 }
0x190e   : > { %v2153_v22 = vpop.f32.mrf.mxu0 }
0x190f   : > { %v2154_v26 = vadd.f32 %v3221_v20, %v2153_v22 }
0x1910   : > { %v3591_v27 = vpop.f32.mrf.mxu0 }
0x1911   : > { %2326 = vrot.lane.b32.xlu1 %v2154_v26, %s4055_s18  ;;  %3595 = vmatmul.mubr.msk.f32.vlgmr.msra.gmra.mxu1 %vm44_vm1, %v2154_v26  ;;  %v2672_v26 = vld [vmem:[%s4977_s5 + $0x130] sm:$0xff]  ;;  %v2671_v27 = vld [vmem:[%s4977_s5 + $0xe0] sm:$0xff] }
0x1912   : > { %3599 = vmatprep.mubr.msk.f32.mxu1 %vm4051_vm13, %v4050_v52 }
0x1983   : > { %v2327_v28 = vpop.permute.xlu1 %2326 }
0x1984   : > { %3605 = vmatmul.mubr.msk.f32.vlgmr.msra.gmra.mxu0 %vm44_vm1, %v2327_v28  ;;  %v2670_v28 = vld [vmem:[%s4977_s5 + $0x90] sm:$0xff] }
0x1985   : > { %3616 = vmatprep.mubr.msk.f32.mxu0 %vm4051_vm13, %v4050_v52  ;;  %3613 = vmatpush3.msra.mxu0 %v2160_v2  ;;  %v2754_v2 = vld [vmem:[%s4978_s6 + $0x90] sm:$0xff] }
0x1986   : > { %3614 = vmatprep.subr.mxu0 %v4050_v52 }
0x1987   : > { %3615 = vmatpush3.msra.mxu0 %v2159_v48  ;;  %v2753_v48 = vld [vmem:[%s4978_s6 + $0x88] sm:$0xff] }
0x1988   : > { %3626 = vmatprep.subr.mxu0 %v4050_v52 }
0x19d1   : > { %v2234_v30 = vpop.f32.mrf.mxu1 }
0x19d2   : > { %v2238_v31 = vmul.f32 0.25, %v2234_v30  ;;  %v2669_v30 = vld [vmem:[%s4977_s5 + $0x40] sm:$0xff] }
0x19d3   : > { %v3596_v35 = vpop.f32.mrf.mxu1 }
0x19d4   : > { %v2239_v43 = vsel %vm604_vm9, %v2238_v31, -inf  ;;  %v2766_v35 = vld [vmem:[%s4978_s6 + $0xf0] sm:$0xff] }
0x19d5   : > { %2240 = vmax.xlane.f32.xlu0 %v2239_v43  ;;  %v2765_v43 = vld [vmem:[%s4978_s6 + $0xe8] sm:$0xff] }
0x19eb   : > { %2248 = vrot.lane.b32.xlu0 %v4536_v21, %s4053_s17 }
0x1a44   : > { %v2400_v44 = vpop.f32.mrf.mxu0 }
0x1a45   : > { %v2404_v45 = vmul.f32 0.25, %v2400_v44  ;;  %v2764_v44 = vld [vmem:[%s4978_s6 + $0xe0] sm:$0xff] }
0x1a46   : > { %v3606_v46 = vpop.f32.mrf.mxu0 }
0x1a47   : > { %v2405_v47 = vsel %vm604_vm9, %v2404_v45, -inf  ;;  %v2762_v46 = vld [vmem:[%s4978_s6 + $0xd0] sm:$0xff] }
0x1a48   : > { %2406 = vmax.xlane.f32.xlu1 %v2405_v47  ;;  %v2761_v47 = vld [vmem:[%s4978_s6 + $0xc8] sm:$0xff] }
0x1a59   : > { %2414 = vrot.lane.b32.xlu1 %v4536_v21, %s4054_s0  ;;  %v2952_v21 = vld [vmem:[%s4977_s5 + $0x48] sm:$0xff] (%p1409_p3) }
0x1a5e   : > { %v2241_v49 = vpop.xlane.xlu0 %2240 }
0x1a5f   : > { %v2242_v51 = vsub.f32 %v2238_v31, %v2241_v49  ;;  %v2767_v31 = vld [vmem:[%s4978_s6 + $0xf8] sm:$0xff]  ;;  %v2760_v49 = vld [vmem:[%s4978_s6 + $0xc0] sm:$0xff] }
0x1a61   : > { %v2243_v32 = vmul.f32 1.442695, %v2242_v51  ;;  %v2759_v51 = vld [vmem:[%s4978_s6 + $0xb8] sm:$0xff] }
0x1a62   : > { %v2249_v53 = vpop.permute.xlu0 %2248 }
0x1a63   : > { %3859 = vpow2.f32 %v2243_v32  ;;  %3598 = vmatpush3.msra.mxu1 %v2249_v53  ;;  %v2758_v32 = vld [vmem:[%s4978_s6 + $0xb0] sm:$0xff]  ;;  %v2757_v53 = vld [vmem:[%s4978_s6 + $0xa8] sm:$0xff] }
0x1a64   : > { %3607 = vmatprep.subr.mxu1 %v4050_v52 }
0x1a70   : > { %v3860_v54 = vpop.eup %3859 }
0x1a71   : > { %3600 = vmatmul.mubr.msk.f32.vlgmr.msra.gmra.mxu1 %vm604_vm9, %v3860_v54  ;;  %v2245_v55 = vsel %vm604_vm9, %v3860_v54, 0.0  ;;  %v2756_v54 = vld [vmem:[%s4978_s6 + $0xa0] sm:$0xff] }
0x1a72   : > { %2246 = vadd.xlane.f32.xlu0 %v2245_v55  ;;  %3609 = vmatprep.mubr.msk.f32.mxu1 %vm4051_vm13, %v4050_v52  ;;  %v2755_v55 = vld [vmem:[%s4978_s6 + $0x98] sm:$0xff] }
0x1ad1   : > { %v2407_v56 = vpop.xlane.xlu1 %2406 }
0x1ad2   : > { %v2408_v57 = vsub.f32 %v2404_v45, %v2407_v56  ;;  %v2763_v45 = vld [vmem:[%s4978_s6 + $0xd8] sm:$0xff] }
0x1ad4   : > { %v2409_v59 = vmul.f32 1.442695, %v2408_v57 }
0x1ad5   : > { %v2415_v58 = vpop.permute.xlu1 %2414 }
0x1ad6   : > { %3861 = vpow2.f32 %v2409_v59  ;;  %3608 = vmatpush3.msra.mxu1 %v2415_v58 }
0x1ad7   : > { %3619 = vmatprep.subr.mxu1 %v4050_v52 }
0x1ae3   : > { %v3862_v62 = vpop.eup %3861 }
0x1ae4   : > { %3610 = vmatmul.mubr.msk.f32.vlgmr.msra.gmra.mxu1 %vm604_vm9, %v3862_v62  ;;  %v2411_v63 = vsel %vm604_vm9, %v3862_v62, 0.0 }
0x1ae5   : > { %2412 = vadd.xlane.f32.xlu1 %v2411_v63  ;;  %3620 = vmatpush3.msra.mxu1 %v2158_v61  ;;  %v3232_v61 = vld [vmem:[%s4979_s7 + $0x17] ss:$0 sm:$0xff]  ;;  %v3233_v63 = vld [vmem:[%s4979_s7 + $0x18] ss:$0 sm:$0xff] }
0x1ae6   : > { %3621 = vmatprep.subr.mxu1 %v4050_v52  ;;  %3623 = vmatprep.mubr.msk.f32.mxu1 %vm4051_vm13, %v4050_v52 }
0x1ae7   : > { %3622 = vmatpush3.msra.mxu1 %v2157_v0 }
0x1ae8   : > { %3637 = vmatprep.subr.mxu1 %v4050_v52 }
0x1afb   : > { %v2247_v1 = vpop.xlane.xlu0 %2246 }
0x1afc   : > { %3863 = vrcp.f32 %v2247_v1 }
0x1b09   : > { %v3864_v3 = vpop.eup %3863 }
0x1b31   : > { %v2320_v5 = vpop.f32.mrf.mxu1 }
0x1b32   : > { %v2325_v6 = vmul.f32 %v3864_v3, %v2320_v5  ;;  %v2752_v3 = vld [vmem:[%s4978_s6 + $0x80] sm:$0xff]  ;;  %v3234_v5 = vld [vmem:[%s4979_s7 + $0x19] ss:$0 sm:$0xff] }
0x1b33   : > { %v3601_v9 = vpop.f32.mrf.mxu1 }
0x1b34   : > { %3624 = vmatmul.mubr.msk.f32.vlgmr.msra.gmra.mxu1 %vm44_vm1, %v2325_v6 }
0x1b35   : > { %3669 = vmatprep.mubr.msk.f32.mxu1 %vm4051_vm13, %v4050_v52  ;;  %3638 = vmatpush3.msra.mxu1 %v2767_v31 }
0x1b36   : > { %3639 = vmatprep.subr.mxu1 %v4050_v52 }
0x1b37   : > { %3640 = vmatpush3.msra.mxu1 %v2766_v35 }
0x1b38   : > { %3641 = vmatprep.subr.mxu1 %v4050_v52 }
0x1b39   : > { %3642 = vmatpush3.msra.mxu1 %v2765_v43 }
0x1b3a   : > { %3643 = vmatprep.subr.mxu1 %v4050_v52 }
0x1b3b   : > { %3644 = vmatpush3.msra.mxu1 %v2764_v44  ;;  %v3240_v44 = vld [vmem:[%s4979_s7 + $0x20] ss:$0 sm:$0xff] }
0x1b3c   : > { %3645 = vmatprep.subr.mxu1 %v4050_v52 }
0x1b3d   : > { %3646 = vmatpush3.msra.mxu1 %v2763_v45 }
0x1b3e   : > { %3647 = vmatprep.subr.mxu1 %v4050_v52 }
0x1b3f   : > { %3648 = vmatpush3.msra.mxu1 %v2762_v46 }
0x1b40   : > { %3649 = vmatprep.subr.mxu1 %v4050_v52 }
0x1b41   : > { %3650 = vmatpush3.msra.mxu1 %v2761_v47 }
0x1b42   : > { %3651 = vmatprep.subr.mxu1 %v4050_v52 }
0x1b43   : > { %3652 = vmatpush3.msra.mxu1 %v2760_v49 }
0x1b44   : > { %3653 = vmatprep.subr.mxu1 %v4050_v52 }
0x1b45   : > { %3654 = vmatpush3.msra.mxu1 %v2759_v51 }
0x1b46   : > { %3655 = vmatprep.subr.mxu1 %v4050_v52 }
0x1b47   : > { %3656 = vmatpush3.msra.mxu1 %v2758_v32 }
0x1b48   : > { %3657 = vmatprep.subr.mxu1 %v4050_v52 }
0x1b49   : > { %3658 = vmatpush3.msra.mxu1 %v2757_v53  ;;  %v2899_v53 = vstv %s2898_s14 }
0x1b4a   : > { %3659 = vmatprep.subr.mxu1 %v4050_v52  ;;  %vm2900_vm14 = vcmp.eq.s32.totalorder %v2899_v53, 1 }
0x1b4b   : > { %3660 = vmatpush3.msra.mxu1 %v2756_v54 }
0x1b4c   : > { %3661 = vmatprep.subr.mxu1 %v4050_v52 }
0x1b4d   : > { %3662 = vmatpush3.msra.mxu1 %v2755_v55 }
0x1b4e   : > { %3663 = vmatprep.subr.mxu1 %v4050_v52 }
0x1b4f   : > { %3664 = vmatpush3.msra.mxu1 %v2754_v2 }
0x1b50   : > { %3665 = vmatprep.subr.mxu1 %v4050_v52 }
0x1b51   : > { %3666 = vmatpush3.msra.mxu1 %v2753_v48 }
0x1b52   : > { %3667 = vmatprep.subr.mxu1 %v4050_v52 }
0x1b53   : > { %3668 = vmatpush3.msra.mxu1 %v2752_v3 }
0x1b6e   : > { %v2413_v29 = vpop.xlane.xlu1 %2412 }
0x1b6f   : > { %3865 = vrcp.f32 %v2413_v29 }
0x1b7c   : > { %v3866_v34 = vpop.eup %3865 }
0x1ba4   : > { %v2486_v38 = vpop.f32.mrf.mxu1 }
0x1ba5   : > { %v2491_v39 = vmul.f32 %v3866_v34, %v2486_v38  ;;  %v3236_v38 = vld [vmem:[%s4979_s7 + $0x1a] ss:$0 sm:$0xff] }
0x1ba6   : > { %v3611_v37 = vpop.f32.mrf.mxu1 }
0x1ba7   : > { %3617 = vmatmul.mubr.msk.f32.vlgmr.msra.gmra.mxu0 %vm44_vm1, %v2491_v39 }
0x1ba8   : > { %3634 = vmatprep.mubr.msk.f32.mxu0 %vm4051_vm13, %v4050_v52  ;;  %3627 = vmatpush3.msra.mxu0 %v2672_v26 }
0x1ba9   : > { %3628 = vmatprep.subr.mxu0 %v4050_v52 }
0x1baa   : > { %3629 = vmatpush3.msra.mxu0 %v2671_v27  ;;  %v3238_v27 = vld [vmem:[%s4979_s7 + $0x1e] ss:$0 sm:$0xff] }
0x1bab   : > { %3630 = vmatprep.subr.mxu0 %v4050_v52 }
0x1bac   : > { %3631 = vmatpush3.msra.mxu0 %v2670_v28 }
0x1bad   : > { %3632 = vmatprep.subr.mxu0 %v4050_v52 }
0x1bae   : > { %3633 = vmatpush3.msra.mxu0 %v2669_v30  ;;  %v3239_v30 = vld [vmem:[%s4979_s7 + $0x1f] ss:$0 sm:$0xff] }
0x1baf   :  { %3672 = vmatprep.subr.mxu0 (%p1409_p3), %v4038_v7 }
0x1bf4   : > { %v2634_v40 = vpop.f32.mrf.mxu1 }
0x1bf6   : > { %v3625_v41 = vpop.f32.mrf.mxu1 }
0x1c67   : > { %v2561_v12 = vpop.f32.mrf.mxu0 }
0x1c68   : > { %v2635_v13 = vadd.f32 %v2634_v40, %v2561_v12 }
0x1c69   : > { %v3618_v14 = vpop.f32.mrf.mxu0 }
0x1c6a   : > { %v2642_v8 = vadd.f32 %v3231_v42, %v2635_v13 }
0x1c6c   : > { %v4778_v15 = vadd.f32 %v2642_v8, %v4691_v4 }
0x1c6e   : > { %v2646_v16 = vsel %vm404_vm7, %v4778_v15, 0.0 }
0x1c6f   : > { %2647 = vadd.xlane.f32.xlu0 %v2646_v16 }
0x1cf8   : > { %v2648_v17 = vpop.xlane.xlu0 %2647 }
0x1cf9   : > { %v2649_v50 = vmul.f32 0.03125, %v2648_v17 }
0x1cfb   : > { %v2650_v19 = vsub.f32 %v4778_v15, %v2649_v50 }
0x1cfd   : > { %v2651_v20 = vmul.f32 %v2650_v19, %v2650_v19 }
0x1cff   : > { %v2652_v22 = vsel %vm404_vm7, %v2651_v20, 0.0 }
0x1d00   : > { %2653 = vadd.xlane.f32.xlu0 %v2652_v22 }
0x1d89   : > { %v2654_v56 = vpop.xlane.xlu0 %2653 }
0x1d8a   : > { %v2655_v57 = vmul.f32 0.03125, %v2654_v56 }
0x1d8c   : > { %v2656_v59 = vadd.f32 1e-05, %v2655_v57 }
0x1d8e   : > { %3867 = vrsqrt.f32 %v2656_v59 }
0x1d9b   : > { %v3868_v58 = vpop.eup %3867 }
0x1d9c   : > { %v2658_v62 = vmul.f32 %v3868_v58, %v2650_v19 }
0x1d9e   : > { %v2663_v0 = vmul.f32 %v3232_v61, %v2658_v62 }
0x1da0   : > { %v2668_v1 = vadd.f32 %v3233_v63, %v2663_v0 }
0x1da2   : > { %3635 = vmatmul.mubr.msk.f32.vlgmr.msra.gmra.mxu0 %vm404_vm7, %v2668_v1 }
0x1da3   :  { %3680 = vmatprep.mubr.msk.f32.mxu0 (%p1409_p3), %vm4039_vm0, %v4038_v7  ;;  %vm3047_vm0 = vcmask (%p1409_p3), 7168  }
0x1e62   : > { %v2747_v6 = vpop.f32.mrf.mxu0 }
0x1e63   : > { %v2748_v9 = vadd.f32 %v3234_v5, %v2747_v6 }
0x1e64   : > { %v3636_v29 = vpop.f32.mrf.mxu0 }
0x1e65   : > { %v2751_v34 = vmax.f32 %v2748_v9, 0.0 }
0x1e67   : > { %3670 = vmatmul.mubr.f32.vlgmr.msra.gmra.mxu1 %v2751_v34 }
0x1f27   : > { %v2839_v39 = vpop.f32.mrf.mxu1 }
0x1f28   : > { %v2840_v37 = vadd.f32 %v3236_v38, %v2839_v39 }
0x1f29   : > { %v3671_v40 = vpop.f32.mrf.mxu1 }
0x1f2a   : > { %v2843_v41 = vadd.f32 %v2840_v37, %v4778_v15 }
0x1f2c   : > { %v2844_v42 = vsub.f32 %v2843_v41, %v4691_v4 }
0x1f2e   : > { %v2845_v12 = vmul.f32 %v2844_v42, %v4578_v33 }
0x1f30   : > { %v4879_v32 = vadd.f32 %v2845_v12, %v4691_v4   ;;  %v3237_v4 = vld [vmem:[%s4979_s7 + $0x1d] ss:$0 sm:$0xff] }
0x1f32   : > { %v2851_v13 = vsel %vm404_vm7, %v4879_v32, 0.0 }
0x1f33   : > { %2852 = vadd.xlane.f32.xlu0 %v2851_v13 }
0x1fbc   : > { %v2853_v14 = vpop.xlane.xlu0 %2852 }
0x1fbd   : > { %v2854_v8 = vmul.f32 0.03125, %v2853_v14 }
0x1fbf   : > { %v2855_v16 = vsub.f32 %v4879_v32, %v2854_v8 }
0x1fc1   : > { %v2856_v17 = vmul.f32 %v2855_v16, %v2855_v16 }
0x1fc3   : > { %v2857_v50 = vsel %vm404_vm7, %v2856_v17, 0.0 }
0x1fc4   : > { %2858 = vadd.xlane.f32.xlu1 %v2857_v50 }
0x204d   : > { %v2859_v15 = vpop.xlane.xlu1 %2858 }
0x204e   : > { %v2860_v19 = vmul.f32 0.03125, %v2859_v15  ;;  %v3245_v15 = vld [vmem:[%s4979_s7 + $0x21] ss:$0 sm:$0xff] (%p1409_p3) }
0x2050   : > { %v2861_v20 = vadd.f32 1e-05, %v2860_v19 }
0x2052   : > { %3869 = vrsqrt.f32 %v2861_v20 }
0x205f   : > { %v3870_v22 = vpop.eup %3869 }
0x2060   : > { %v2863_v26 = vmul.f32 %v3870_v22, %v2855_v16  ;;  %v3244_v16 = vld [vmem:[%s4979_s7 + $0x1c] ss:$0 sm:$0xff] (%p1409_p3) }
0x2062   : > { %v2868_v28 = vmul.f32 %v3237_v4, %v2863_v26  ;;  %v3048_v26 = vsel (%p1409_p3), %vm3047_vm0, %v4982_v60, 0.0 }
0x2064   : > { %v2873_v31 = vadd.f32 %v3238_v27, %v2868_v28 }
0x2066   : > { %v2878_v35 = vmul.f32 %v3239_v30, %v2873_v31 }
0x2068   : > { %v2879_v43 = vsel %vm404_vm7, %v2878_v35, 0.0 }
0x2069   : > { %2880 = vadd.xlane.f32.xlu0 %v2879_v43 }
0x20f2   : > { %v2881_v45 = vpop.xlane.xlu0 %2880 }
0x20f3   : > { %v2886_v46 = vadd.f32 %v3240_v44, %v2881_v45 }
0x20f5   : > { %v3241_v47 = vmul.f32 -1.442695, %v2886_v46 }
0x20f7   : > { %3871 = vpow2.f32 %v3241_v47 }
0x2104   : > { %v3872_v49 = vpop.eup %3871 }
0x2105   : > { %v2890_v51 = vadd.f32 1.0, %v3872_v49 }
0x2107   : > { %3873 = vrcp.f32 %v2890_v51 }
0x2114   : > { %v3874_v54 = vpop.eup %3873 }
0x2115   : > { %v2893_v55 = vadd.f32 %v4023_v10, %v3874_v54 }
0x2117   : > { %vm2894_vm15 = vcmp.lt.f32.partialorder %v2893_v55, 0.99  ;;  %v2902_v56 = vsub.f32 1.0, %v2893_v55  ;;  %v2917_v57 = vsub.f32 %v2893_v55, %v4023_v10 }
0x2118   : > { %v3242_v59 = vsel %vm2894_vm15, 1.0, %v4050_v52 }
0x2119   : > { %v2901_v58 = vsel %vm2900_vm14, 0.0, %v3242_v59  ;;  %v2903_v61 = vsub.f32 %v2902_v56, %v4019_v25  ;;  %v2918_v62 = vmul.f32 %v4015_v24, %v2917_v57 }
0x211a   : > { %v2926_v63 = vmul.f32 %v4015_v24, %v2901_v58   ;;  %v2906_v2 = vsub.f32 1.0, %v2901_v58  ;;  %v2908_v3 = vmul.f32 %v3874_v54, %v2901_v58 }
0x211b   : > { %v2904_v0 = vmul.f32 %v2903_v61, %v2901_v58  ;;  %v2919_v10 = vadd.f32 %v4023_v10, %v2918_v62  }
0x211d   : > { %v2905_v1 = vadd.f32 %v4019_v25, %v2904_v0 }
0x211f   : > { %v2907_v48 = vmul.f32 %v2906_v2, %v2905_v1  ;;  %v2920_v5 = vsub.f32 %v2905_v1, %v4019_v25 }
0x2121   : > { %v2909_v6 = vadd.f32 %v2908_v3, %v2907_v48  ;;  %v2921_v52 = vmul.f32 %v4015_v24, %v2920_v5  ;;  %v4986_v24 = vmov %v2926_v63 }
0x2123   : > { %v2922_v9 = vadd.f32 %v4019_v25, %v2921_v52   ;;  %2912 = vperm.xlu1 %3846, %v2909_v6  }
0x2125   : > { %v4987_v25 = vmov %v2922_v9 }
0x219e   : > { %v2913_v29 = vpop.permute.xlu1 %2912 }
0x219f   : > { %v2915_v34 = vmul.f32 %v2913_v29, %v4879_v32  ;;  %v2955_v32 = vld [vmem:[%s4977_s5 + $0x138] sm:$0xff] (%p1409_p3) }
0x21a0   :  { %3673 = vmatpush3.msra.mxu0 (%p1409_p3), %v2955_v32 }
0x21a1   : > { %v2916_v38 = vadd.f32 %v4027_v11, %v2915_v34  ;;  %3674 = vmatprep.subr.mxu0 (%p1409_p3), %v4038_v7 }
0x21a2   :  { %3675 = vmatpush3.msra.mxu0 (%p1409_p3), %v2954_v36 }
0x21a3   : > { %v2923_v39 = vsub.f32 %v2916_v38, %v4027_v11  ;;  %3676 = vmatprep.subr.mxu0 (%p1409_p3), %v4038_v7 }
0x21a4   :  { %3677 = vmatpush3.msra.mxu0 (%p1409_p3), %v2953_v18 }
0x21a5   : > { %v2924_v37 = vmul.f32 %v2923_v39, %v4578_v33  ;;  %1411 = sbr.rel (!%p1409_p3) target bundleno = 4045 (0xfcd), region = 87  ;;  %3678 = vmatprep.subr.mxu0 (%p1409_p3), %v4038_v7  ;;  %v3059_v7 = vsel (%p1409_p3), %vm3047_vm0, %v2922_v9, 0.0 }
0x21a6   :  { %3679 = vmatpush3.msra.mxu0 (%p1409_p3), %v2952_v21 }
0x21a7   : > { %v2925_v40 = vadd.f32 %v4027_v11, %v2924_v37  }
0x21a9   : > { %v4988_v11 = vmov %v2925_v40  ;;  %v2929_v33 = vsel (%p1409_p3), %vm404_vm7, %v2925_v40, 0.0 }
0x21aa   :  { %2930 = vadd.xlane.f32.xlu0 %v2929_v33  ;;  %v3243_v11 = vld [vmem:[%s4979_s7 + $0x1b] ss:$0 sm:$0xff] }
0x2233   :  { %v2931_v41 = vpop.xlane.xlu0 %2930 }
0x2234   :  { %v2932_v42 = vmul.f32 0.03125, %v2931_v41 }
0x2236   :  { %v2933_v12 = vsub.f32 %v2925_v40, %v2932_v42 }
0x2238   :  { %v2934_v13 = vmul.f32 %v2933_v12, %v2933_v12 }
0x223a   :  { %v2935_v14 = vsel %vm404_vm7, %v2934_v13, 0.0 }
0x223b   :  { %2936 = vadd.xlane.f32.xlu0 %v2935_v14 }
0x223f   :  { %3060 = vadd.xlane.f32.xlu0 %v3059_v7 }
0x22c4   :  { %v2937_v23 = vpop.xlane.xlu0 %2936 }
0x22c5   :  { %v2938_v24 = vmul.f32 0.03125, %v2937_v23 }
0x22c7   :  { %v2939_v25 = vadd.f32 1e-05, %v2938_v24 }
0x22c8   :  { %v3061_v27 = vpop.xlane.xlu0 %3060 }
0x22c9   :  { %3875 = vrsqrt.f32 %v2939_v25  ;;  %v3062_v28 = vrot.slane %v3061_v27, 4 }
0x22cb   :  { %v3063_v30 = vadd.f32 %v3062_v28, %v3061_v27 }
0x22cd   :  { %v3064_v43 = vrot.slane %v3063_v30, 2 }
0x22cf   :  { %v3065_v47 = vadd.f32 %v3064_v43, %v3063_v30 }
0x22d1   :  { %v3066_v53 = vrot.slane %v3065_v47, 1 }
0x22d3   :  { %v3067_v56 = vadd.f32 %v3066_v53, %v3065_v47 }
0x22d6   :  { %v3876_v10 = vpop.eup %3875 }
0x22d7   :  { %v2941_v8 = vmul.f32 %v3876_v10, %v2933_v12 }
0x22d9   :  { %v2946_v17 = vmul.f32 %v3243_v11, %v2941_v8 }
0x22db   :  { %v2951_v50 = vadd.f32 %v3244_v16, %v2946_v17 }
0x22dd   :  { %3681 = vmatmul.mubr.msk.f32.vlgmr.msra.gmra.mxu0 %vm404_vm7, %v2951_v50 }
0x239d   :  { %v3030_v19 = vpop.f32.mrf.mxu0 }
0x239e   :  { %v3031_v20 = vadd.f32 %v3245_v15, %v3030_v19 }
0x239f   :  { %v3682_v22 = vpop.f32.mrf.mxu0 }
0x23a0   :  { %v3034_v4 = vsel %vm44_vm1, %v3031_v20, -inf }
0x23a1   :  { %3035 = vmax.xlane.f32.xlu1 %v3034_v4 }
0x23a5   :  { %3049 = vadd.xlane.f32.xlu1 %v3048_v26 }
0x242a   :  { %v3036_v31 = vpop.xlane.xlu1 %3035 }
0x242b   :  { %v3037_v35 = vsub.f32 %v3031_v20, %v3036_v31 }
0x242d   :  { %v3038_v44 = vmul.f32 1.442695, %v3037_v35 }
0x242e   :  { %v3050_v45 = vpop.xlane.xlu1 %3049 }
0x242f   :  { %3877 = vpow2.f32 %v3038_v44  ;;  %v3051_v46 = vrot.slane %v3050_v45, 4 }
0x2431   :  { %v3052_v49 = vadd.f32 %v3051_v46, %v3050_v45 }
0x2433   :  { %v3053_v51 = vrot.slane %v3052_v49, 2 }
0x2435   :  { %v3054_v54 = vadd.f32 %v3053_v51, %v3052_v49 }
0x2437   :  { %v3055_v55 = vrot.slane %v3054_v54, 1 }
0x2439   :  { %v3056_v57 = vadd.f32 %v3055_v55, %v3054_v54 }
0x243b   :  { %3683 = vpush %v3056_v57 }
0x243c   :  { %v3878_v60 = vpop.eup %3877  ;;  %3685 = vpush %v3067_v56 }
0x243d   :  { %v3040_v59 = vsel %vm44_vm1, %v3878_v60, 0.0 }
0x243e   :  { %3041 = vadd.xlane.f32.xlu1 %v3040_v59 }
0x246c   :  { %s3684_s7 = spop %3683 }
0x246d   :  { %v3058_v58 = vstv %s3684_s7  ;;  %s3686_s23 = spop %3685 }
0x246e   :  { %v3069_v61 = vstv %s3686_s23 }
0x246f   :  { %v3070_v62 = vadd.f32 %v3069_v61, %v3058_v58 }
0x2471   :  { %v3072_v63 = vmul.f32 0.0625, %v3070_v62 }
0x2473   :  { %v3073_v0 = vmul.f32 0.01, %v3072_v63 }
0x2475   :  { %3075 = vst.msk [vmem:[#allocation4] sm:$0x1] %vm3074_vm2, %v3073_v0 }
0x2476   :  { %3892 = shalt.err (!%p3889_p8)
}
0x2477   :  { %3095 = dma.vmem_to_hbm [thread:$0]  %s3093_s25, 16, %s4981_s9, [#allocation5]  }
0x2478   :  { %s4058_s30 = smov [#allocation2]  }
0x2479   :  { %s3082_s10 = sshll.u32 %s4058_s30, 4  ;;  %s3083_s10 = int_to_ptr.vmem [resolvable:$true] %s3082_s10 }
0x247a   :  { %s3901_s16 = scalar_lea.vmem %s3083_s10, 128  ;;  %p3906_p10 = scmp.lt.s32.totalorder %s3083_s10, %s3083_s10 }
0x247b   :  { %p3902_p9 = scmp.ne.s32.totalorder %s3083_s10, %s3901_s16  ;;  %p3907_p11 = scmp.lt.s32.totalorder %s3901_s16, %s3901_s16 }
0x247d   :  { %p3908_p12 = por %p3907_p11, %p3906_p10 }
0x247f   :  { %p3909_p13 = pnand %p3908_p12, %p3902_p9 }
0x24c7   :  { %v3042_v1 = vpop.xlane.xlu1 %3041 }
0x24c8   :  { %3879 = vlog2.f32 %v3042_v1 }
0x24d5   :  { %v3880_v2 = vpop.eup %3879 }
0x24d6   :  { %v3044_v48 = vmul.f32 0.6931472, %v3880_v2 }
0x24d8   :  { %v3045_v3 = vsub.f32 %v3037_v35, %v3044_v48 }
0x24da   :  { %3046 = vst.msk [vmem:[#allocation2] sm:$0xff] %vm44_vm1, %v3045_v3 }
0x24db   :  { %3912 = shalt.err (!%p3909_p13)
}
0x24dc   :  { %3085 = dma.vmem_to_hbm [thread:$0]  %s3083_s10, 128, %s4980_s8, [#allocation3]  }
0x24dd   :  { %3977 = dma.done.wait [#allocation3], 128  }
0x24de   :  { %3978 = vsyncadd [#allocation3], 4294967168 }
0x24df   :  { %3979 = dma.done.wait [#allocation5], 16  }
0x24e0   :  { %3980 = vsyncadd [#allocation5], 4294967280 }
0x24e1   :  { %3102 = vsyncpa [#allocation3], 1 }
0x24e2   :  { %3103 = vsyncpa [#allocation5], 1 }

</bundles_post_ra>
